<compile_context>
chip_gen: v6e
topology: v6e:2x2x1
jax: 0.10.0
libtpu: 0.0.40
codegen_flags: <defaults>
</compile_context>

<pallas_src>
import functools

import jax
import jax.numpy as jnp
from jax.experimental import pallas as pl
from jax.experimental.pallas import tpu as pltpu


# ---------------------------------------------------------------------------
# Position encoding (matches the PyTorch double loop exactly).
# ---------------------------------------------------------------------------
def _position_encoding(seq_len, embed_dim):
    i = jnp.arange(seq_len, dtype=jnp.float32)[:, None]          # (L, 1)
    j = jnp.arange(embed_dim, dtype=jnp.float32)[None, :]        # (1, E)
    pos = i / jnp.power(10000.0, 2.0 * j / embed_dim)             # (L, E)
    even = (jnp.arange(embed_dim)[None, :] % 2) == 0
    return jnp.where(even, jnp.sin(pos), jnp.cos(pos))


# ---------------------------------------------------------------------------
# Fused Decoder kernel: one batch element (L, E) per grid step.
# ---------------------------------------------------------------------------
def _decoder_kernel(
    x_ref, enc_ref, pe_ref,
    wi_self_ref, bi_self_ref, wo_self_ref, bo_self_ref,
    wi_cross_ref, bi_cross_ref, wo_cross_ref, bo_cross_ref,
    w1_ref, b1_ref, w2_ref, b2_ref,
    lnw_ref, lnb_ref,
    o_ref,
    *, num_heads, head_dim,
):
    f32 = jnp.float32
    L, E = x_ref.shape
    inv_n = 1.0 / float(L * E)
    scale = float(head_dim) ** -0.5

    ln_w = lnw_ref[...]
    ln_b = lnb_ref[...]

    def attention(q_src, kv_src, w_in_t, b_in, w_out_t, b_out):
        # nn.MultiheadAttention: in-projection (fused when q is k is v).
        if q_src is kv_src:
            qkv = jnp.dot(q_src, w_in_t, preferred_element_type=f32) + b_in
            q, k, v = qkv[:, :E], qkv[:, E:2 * E], qkv[:, 2 * E:]
        else:
            q = jnp.dot(q_src, w_in_t[:, :E], preferred_element_type=f32) + b_in[:, :E]
            kv = jnp.dot(kv_src, w_in_t[:, E:], preferred_element_type=f32) + b_in[:, E:]
            k, v = kv[:, :E], kv[:, E:]
        q = q * scale

        # Per-head attention.  Heads are (8, 8) tiles here: a head-batched
        # contraction would be unrolled by Mosaic anyway and the lane-splitting
        # (L, E) -> (L, H, Dh) reshape only adds relayouts, so keep the static
        # loop.  Scores use dot_general dimension numbers (contract the head
        # dims of q and k) instead of materializing k.T.
        dn_qk = (((1,), (1,)), ((), ()))
        outs = []
        for h in range(num_heads):
            sl = slice(h * head_dim, (h + 1) * head_dim)
            s = jax.lax.dot_general(q[:, sl], k[:, sl], dn_qk,
                                    preferred_element_type=f32)      # (L, L)
            s = s - jnp.max(s, axis=-1, keepdims=True)
            p = jnp.exp(s)
            # divide -> EUP reciprocal; VALU stays free.
            p = p * pl.reciprocal(jnp.sum(p, axis=-1, keepdims=True), approx=True)
            outs.append(jnp.dot(p, v[:, sl], preferred_element_type=f32))
        attn = jnp.concatenate(outs, axis=-1)                         # (L, E)
        return jnp.dot(attn, w_out_t, preferred_element_type=f32) + b_out

    def add_norm(residual, sub_out):
        # AddNorm: LayerNorm([seq_len, embed_dim]) -> normalize over the whole
        # (L, E) tile of this batch element (biased variance, eps=1e-5).
        y = residual + sub_out
        mu = jnp.sum(jnp.sum(y, axis=1, keepdims=True), axis=0, keepdims=True) * inv_n
        d = y - mu
        var = jnp.sum(jnp.sum(d * d, axis=1, keepdims=True), axis=0, keepdims=True) * inv_n
        return d * jax.lax.rsqrt(var + 1e-5) * ln_w + ln_b

    # ---- position encoding -------------------------------------------------
    x0 = x_ref[...] + pe_ref[...]
    enc = enc_ref[...]

    # ---- self attention + AddNorm ------------------------------------------
    sa = attention(x0, x0, wi_self_ref[...], bi_self_ref[...],
                   wo_self_ref[...], bo_self_ref[...])
    x1 = add_norm(x0, sa)

    # ---- cross attention (query = encoder output, key/value = x1) + AddNorm -
    ca = attention(enc, x1, wi_cross_ref[...], bi_cross_ref[...],
                   wo_cross_ref[...], bo_cross_ref[...])
    x2 = add_norm(x1, ca)

    # ---- feed forward + AddNorm ---------------------------------------------
    h = jnp.dot(x2, w1_ref[...], preferred_element_type=f32) + b1_ref[...]
    h = jnp.where(h > 0, h, 0.01 * h)            # leaky_relu, default slope 0.01
    ff = jnp.dot(h, w2_ref[...], preferred_element_type=f32) + b2_ref[...]
    o_ref[...] = add_norm(x2, ff).astype(o_ref.dtype)


# ---------------------------------------------------------------------------
# Wrapper.
# ---------------------------------------------------------------------------
def decoder_forward(x, encoder_output,
                    w_in_self, b_in_self, w_out_self, b_out_self,
                    w_in_cross, b_in_cross, w_out_cross, b_out_cross,
                    w1, b1, w2, b2, ln_w, ln_b, *, num_heads):
    """x, encoder_output: (B, L, E).  Returns (B, L, E) like Decoder.forward."""
    B, L, E = x.shape
    FF = w1.shape[0]
    assert E % num_heads == 0
    head_dim = E // num_heads

    pe = _position_encoding(L, E).astype(x.dtype)

    # One-time parameter prep (pre-transposed so the kernel feeds the MXU
    # directly; no activation-layout glue is needed — input stays (B, L, E)).
    args = (
        x, encoder_output, pe,
        w_in_self.T, b_in_self.reshape(1, 3 * E),
        w_out_self.T, b_out_self.reshape(1, E),
        w_in_cross.T, b_in_cross.reshape(1, 3 * E),
        w_out_cross.T, b_out_cross.reshape(1, E),
        w1.T, b1.reshape(1, FF), w2.T, b2.reshape(1, E),
        ln_w, ln_b,
    )

    batch_spec = pl.BlockSpec((None, L, E), lambda b: (b, 0, 0))

    def rep(r, c):  # replicated (broadcast) weight spec
        return pl.BlockSpec((r, c), lambda b: (0, 0))

    in_specs = [
        batch_spec, batch_spec, rep(L, E),
        rep(E, 3 * E), rep(1, 3 * E), rep(E, E), rep(1, E),      # self-attn
        rep(E, 3 * E), rep(1, 3 * E), rep(E, E), rep(1, E),      # cross-attn
        rep(E, FF), rep(1, FF), rep(FF, E), rep(1, E),           # feed-forward
        rep(L, E), rep(L, E),                                    # layer norm
    ]

    flops_self = 2 * L * E * 3 * E + 4 * num_heads * L * L * head_dim + 2 * L * E * E
    flops_cross = 2 * L * E * E + 2 * L * E * 2 * E + 4 * num_heads * L * L * head_dim + 2 * L * E * E
    flops_ff = 4 * L * E * FF
    cost = pl.CostEstimate(
        flops=B * (flops_self + flops_cross + flops_ff),
        transcendentals=B * (2 * num_heads * L * L + 16),
        bytes_accessed=int(sum(a.size * a.dtype.itemsize for a in args)
                           + x.size * x.dtype.itemsize),
    )

    return pl.pallas_call(
        functools.partial(_decoder_kernel, num_heads=num_heads, head_dim=head_dim),
        out_shape=jax.ShapeDtypeStruct((B, L, E), x.dtype),
        grid_spec=pltpu.PrefetchScalarGridSpec(
            num_scalar_prefetch=0,
            grid=(B,),
            in_specs=in_specs,
            out_specs=pl.BlockSpec((None, L, E), lambda b: (b, 0, 0)),
        ),
        compiler_params=pltpu.CompilerParams(
            dimension_semantics=("parallel",)),   # B=2 -> one batch per TC on v7x
        cost_estimate=cost,
    )(*args)


# ---------------------------------------------------------------------------
# Pure-JAX reference mirroring the PyTorch Decoder.
# ---------------------------------------------------------------------------
def _mha_ref(query, key_, value, w_in, b_in, w_out, b_out, num_heads):
    B, Lq, E = query.shape
    Lk = key_.shape[1]
    Dh = E // num_heads
    q = query @ w_in[:E].T + b_in[:E]
    k = key_ @ w_in[E:2 * E].T + b_in[E:2 * E]
    v = value @ w_in[2 * E:].T + b_in[2 * E:]
    split = lambda t, Lt: t.reshape(B, Lt, num_heads, Dh).transpose(0, 2, 1, 3)
    qh, kh, vh = split(q, Lq) * Dh ** -0.5, split(k, Lk), split(v, Lk)
    s = jnp.einsum('bhqd,bhkd->bhqk', qh, kh)
    p = jax.nn.softmax(s, axis=-1)
    o = jnp.einsum('bhqk,bhkd->bhqd', p, vh).transpose(0, 2, 1, 3).reshape(B, Lq, E)
    return o @ w_out.T + b_out


def _layer_norm_ref(y, g, b, eps=1e-5):
    mu = jnp.mean(y, axis=(-2, -1), keepdims=True)
    var = jnp.mean((y - mu) ** 2, axis=(-2, -1), keepdims=True)
    return (y - mu) / jnp.sqrt(var + eps) * g + b


def _reference(x, encoder_output,
               w_in_self, b_in_self, w_out_self, b_out_self,
               w_in_cross, b_in_cross, w_out_cross, b_out_cross,
               w1, b1, w2, b2, ln_w, ln_b, *, num_heads):
    B, L, E = x.shape
    x0 = x + _position_encoding(L, E)
    sa = _mha_ref(x0, x0, x0, w_in_self, b_in_self, w_out_self, b_out_self, num_heads)
    x1 = _layer_norm_ref(x0 + sa, ln_w, ln_b)
    ca = _mha_ref(encoder_output, x1, x1,
                  w_in_cross, b_in_cross, w_out_cross, b_out_cross, num_heads)
    x2 = _layer_norm_ref(x1 + ca, ln_w, ln_b)
    h = x2 @ w1.T + b1
    h = jnp.where(h > 0, h, 0.01 * h)
    ff = h @ w2.T + b2
    return _layer_norm_ref(x2 + ff, ln_w, ln_b)


if __name__ == "__main__":
    # Decoder(embed_dim=32, seq_len=8, num_heads=4); inputs (B, L, E) = (2, 8, 32).
    B, L, E, H, FF = 2, 8, 32, 4, 128
    f32 = jnp.float32
    keys = jax.random.split(jax.random.PRNGKey(0), 16)
    s_e = 1.0 / float(E) ** 0.5
    s_f = 1.0 / float(FF) ** 0.5

    x   = jax.random.normal(keys[0], (B, L, E), f32)
    enc = jax.random.normal(keys[1], (B, L, E), f32)

    w_in_self   = jax.random.normal(keys[2], (3 * E, E), f32) * s_e
    b_in_self   = jax.random.normal(keys[3], (3 * E,), f32) * 0.02
    w_out_self  = jax.random.normal(keys[4], (E, E), f32) * s_e
    b_out_self  = jax.random.normal(keys[5], (E,), f32) * 0.02
    w_in_cross  = jax.random.normal(keys[6], (3 * E, E), f32) * s_e
    b_in_cross  = jax.random.normal(keys[7], (3 * E,), f32) * 0.02
    w_out_cross = jax.random.normal(keys[8], (E, E), f32) * s_e
    b_out_cross = jax.random.normal(keys[9], (E,), f32) * 0.02
    w1 = jax.random.normal(keys[10], (FF, E), f32) * s_e
    b1 = jax.random.normal(keys[11], (FF,), f32) * 0.02
    w2 = jax.random.normal(keys[12], (E, FF), f32) * s_f
    b2 = jax.random.normal(keys[13], (E,), f32) * 0.02
    ln_w = 1.0 + 0.1 * jax.random.normal(keys[14], (L, E), f32)
    ln_b = 0.02 * jax.random.normal(keys[15], (L, E), f32)

    params = (w_in_self, b_in_self, w_out_self, b_out_self,
              w_in_cross, b_in_cross, w_out_cross, b_out_cross,
              w1, b1, w2, b2, ln_w, ln_b)

    fwd = jax.jit(functools.partial(decoder_forward, num_heads=H))
    out = jax.block_until_ready(fwd(x, enc, *params))

    ref = _reference(x, enc, *params, num_heads=H)
    assert out.shape == (B, L, E)
    max_err = float(jnp.max(jnp.abs(out - ref)))
    # Tolerance leaves headroom for the approx EUP reciprocal in the softmax.
    assert jnp.allclose(out, ref, atol=5e-3, rtol=5e-3), \
        f"mismatch vs pure-JAX reference (max abs err {max_err})"

    print("KERNEL_OK")
</pallas_src>

<mosaic_0001>
module attributes {stable_mosaic.version = 11 : i64} {
  func.func @_decoder_kernel(%arg0: i32, %arg1: memref<1x8x32xf32, #tpu.memory_space<vmem>>, %arg2: memref<1x8x32xf32, #tpu.memory_space<vmem>>, %arg3: memref<8x32xf32, #tpu.memory_space<vmem>>, %arg4: memref<32x96xf32, #tpu.memory_space<vmem>>, %arg5: memref<1x96xf32, #tpu.memory_space<vmem>>, %arg6: memref<32x32xf32, #tpu.memory_space<vmem>>, %arg7: memref<1x32xf32, #tpu.memory_space<vmem>>, %arg8: memref<32x96xf32, #tpu.memory_space<vmem>>, %arg9: memref<1x96xf32, #tpu.memory_space<vmem>>, %arg10: memref<32x32xf32, #tpu.memory_space<vmem>>, %arg11: memref<1x32xf32, #tpu.memory_space<vmem>>, %arg12: memref<32x128xf32, #tpu.memory_space<vmem>>, %arg13: memref<1x128xf32, #tpu.memory_space<vmem>>, %arg14: memref<128x32xf32, #tpu.memory_space<vmem>>, %arg15: memref<1x32xf32, #tpu.memory_space<vmem>>, %arg16: memref<8x32xf32, #tpu.memory_space<vmem>>, %arg17: memref<8x32xf32, #tpu.memory_space<vmem>>, %arg18: memref<1x8x32xf32, #tpu.memory_space<vmem>>) attributes {dimension_semantics = [#tpu.dimension_semantics<parallel>], iteration_bounds = array<i64: 2>, scalar_prefetch = 0 : i64, scratch_operands = 0 : i64, tpu.core_type = #tpu.core_type<tc>, window_params = [{transform_indices = @transform_0, window_bounds = array<i64: 1, 8, 32>}, {transform_indices = @transform_1, window_bounds = array<i64: 1, 8, 32>}, {pipeline_mode = #tpu.pipeline_mode<synchronous>, transform_indices = @transform_2, window_bounds = array<i64: 8, 32>}, {pipeline_mode = #tpu.pipeline_mode<synchronous>, transform_indices = @transform_3, window_bounds = array<i64: 32, 96>}, {pipeline_mode = #tpu.pipeline_mode<synchronous>, transform_indices = @transform_4, window_bounds = array<i64: 1, 96>}, {pipeline_mode = #tpu.pipeline_mode<synchronous>, transform_indices = @transform_5, window_bounds = array<i64: 32, 32>}, {pipeline_mode = #tpu.pipeline_mode<synchronous>, transform_indices = @transform_6, window_bounds = array<i64: 1, 32>}, {pipeline_mode = #tpu.pipeline_mode<synchronous>, transform_indices = @transform_7, window_bounds = array<i64: 32, 96>}, {pipeline_mode = #tpu.pipeline_mode<synchronous>, transform_indices = @transform_8, window_bounds = array<i64: 1, 96>}, {pipeline_mode = #tpu.pipeline_mode<synchronous>, transform_indices = @transform_9, window_bounds = array<i64: 32, 32>}, {pipeline_mode = #tpu.pipeline_mode<synchronous>, transform_indices = @transform_10, window_bounds = array<i64: 1, 32>}, {pipeline_mode = #tpu.pipeline_mode<synchronous>, transform_indices = @transform_11, window_bounds = array<i64: 32, 128>}, {pipeline_mode = #tpu.pipeline_mode<synchronous>, transform_indices = @transform_12, window_bounds = array<i64: 1, 128>}, {pipeline_mode = #tpu.pipeline_mode<synchronous>, transform_indices = @transform_13, window_bounds = array<i64: 128, 32>}, {pipeline_mode = #tpu.pipeline_mode<synchronous>, transform_indices = @transform_14, window_bounds = array<i64: 1, 32>}, {pipeline_mode = #tpu.pipeline_mode<synchronous>, transform_indices = @transform_15, window_bounds = array<i64: 8, 32>}, {pipeline_mode = #tpu.pipeline_mode<synchronous>, transform_indices = @transform_16, window_bounds = array<i64: 8, 32>}, {transform_indices = @transform_17, window_bounds = array<i64: 1, 8, 32>}]} {
    %c0 = arith.constant 0 : index
    %c0_0 = arith.constant 0 : index
    %0 = vector.load %arg16[%c0, %c0_0] : memref<8x32xf32, #tpu.memory_space<vmem>>, vector<8x32xf32>
    %c0_1 = arith.constant 0 : index
    %c0_2 = arith.constant 0 : index
    %1 = vector.load %arg17[%c0_1, %c0_2] : memref<8x32xf32, #tpu.memory_space<vmem>>, vector<8x32xf32>
    %c0_3 = arith.constant 0 : index
    %c0_4 = arith.constant 0 : index
    %c0_5 = arith.constant 0 : index
    %2 = vector.load %arg1[%c0_3, %c0_4, %c0_5] : memref<1x8x32xf32, #tpu.memory_space<vmem>>, vector<1x8x32xf32>
    %3 = vector.shape_cast %2 : vector<1x8x32xf32> to vector<8x32xf32>
    %c0_6 = arith.constant 0 : index
    %c0_7 = arith.constant 0 : index
    %4 = vector.load %arg3[%c0_6, %c0_7] : memref<8x32xf32, #tpu.memory_space<vmem>>, vector<8x32xf32>
    %5 = arith.addf %3, %4 : vector<8x32xf32>
    %c0_8 = arith.constant 0 : index
    %c0_9 = arith.constant 0 : index
    %c0_10 = arith.constant 0 : index
    %6 = vector.load %arg2[%c0_8, %c0_9, %c0_10] : memref<1x8x32xf32, #tpu.memory_space<vmem>>, vector<1x8x32xf32>
    %7 = vector.shape_cast %6 : vector<1x8x32xf32> to vector<8x32xf32>
    %c0_11 = arith.constant 0 : index
    %c0_12 = arith.constant 0 : index
    %8 = vector.load %arg4[%c0_11, %c0_12] : memref<32x96xf32, #tpu.memory_space<vmem>>, vector<32x96xf32>
    %c0_13 = arith.constant 0 : index
    %c0_14 = arith.constant 0 : index
    %9 = vector.load %arg5[%c0_13, %c0_14] : memref<1x96xf32, #tpu.memory_space<vmem>>, vector<1x96xf32>
    %c0_15 = arith.constant 0 : index
    %c0_16 = arith.constant 0 : index
    %10 = vector.load %arg6[%c0_15, %c0_16] : memref<32x32xf32, #tpu.memory_space<vmem>>, vector<32x32xf32>
    %c0_17 = arith.constant 0 : index
    %c0_18 = arith.constant 0 : index
    %11 = vector.load %arg7[%c0_17, %c0_18] : memref<1x32xf32, #tpu.memory_space<vmem>>, vector<1x32xf32>
    %cst = arith.constant dense<0.000000e+00> : vector<8x96xf32>
    %12 = tpu.matmul %5, %8, %cst {dimension_numbers = #tpu.dot_dimension_numbers<[1], [0], [0], [1], [0, 0, 1, 1], [], []>} : vector<8x32xf32>, vector<32x96xf32>, vector<8x96xf32> -> vector<8x96xf32>
    %13 = vector.broadcast %9 : vector<1x96xf32> to vector<8x96xf32>
    %14 = arith.addf %12, %13 : vector<8x96xf32>
    %15 = vector.extract_strided_slice %14 {offsets = [0, 0], sizes = [8, 32], strides = [1, 1]} : vector<8x96xf32> to vector<8x32xf32>
    %16 = vector.extract_strided_slice %14 {offsets = [0, 32], sizes = [8, 32], strides = [1, 1]} : vector<8x96xf32> to vector<8x32xf32>
    %17 = vector.extract_strided_slice %14 {offsets = [0, 64], sizes = [8, 32], strides = [1, 1]} : vector<8x96xf32> to vector<8x32xf32>
    %cst_19 = arith.constant 0.353553385 : f32
    %18 = vector.broadcast %cst_19 : f32 to vector<8x32xf32>
    %19 = arith.mulf %15, %18 : vector<8x32xf32>
    %20 = vector.extract_strided_slice %19 {offsets = [0, 0], sizes = [8, 8], strides = [1, 1]} : vector<8x32xf32> to vector<8x8xf32>
    %21 = vector.extract_strided_slice %16 {offsets = [0, 0], sizes = [8, 8], strides = [1, 1]} : vector<8x32xf32> to vector<8x8xf32>
    %cst_20 = arith.constant dense<0.000000e+00> : vector<8x8xf32>
    %22 = tpu.matmul %20, %21, %cst_20 {dimension_numbers = #tpu.dot_dimension_numbers<[1], [1], [0], [0], [0, 0, 1, 0], [], []>} : vector<8x8xf32>, vector<8x8xf32>, vector<8x8xf32> -> vector<8x8xf32>
    %cst_21 = arith.constant dense<0xFF800000> : vector<8xf32>
    %23 = vector.multi_reduction <maximumf>, %22, %cst_21 [1] : vector<8x8xf32> to vector<8xf32>
    %24 = vector.shape_cast %23 : vector<8xf32> to vector<8x1xf32>
    %25 = vector.broadcast %24 : vector<8x1xf32> to vector<8x8xf32>
    %26 = arith.subf %22, %25 : vector<8x8xf32>
    %27 = math.exp %26 : vector<8x8xf32>
    %cst_22 = arith.constant dense<0.000000e+00> : vector<8xf32>
    %28 = vector.multi_reduction <add>, %27, %cst_22 [1] : vector<8x8xf32> to vector<8xf32>
    %29 = vector.shape_cast %28 : vector<8xf32> to vector<8x1xf32>
    %30 = tpu.reciprocal %29 {approx = true} : vector<8x1xf32> -> vector<8x1xf32>
    %31 = vector.broadcast %30 : vector<8x1xf32> to vector<8x8xf32>
    %32 = arith.mulf %27, %31 : vector<8x8xf32>
    %33 = vector.extract_strided_slice %17 {offsets = [0, 0], sizes = [8, 8], strides = [1, 1]} : vector<8x32xf32> to vector<8x8xf32>
    %cst_23 = arith.constant dense<0.000000e+00> : vector<8x8xf32>
    %34 = tpu.matmul %32, %33, %cst_23 {dimension_numbers = #tpu.dot_dimension_numbers<[1], [0], [0], [1], [0, 0, 1, 1], [], []>} : vector<8x8xf32>, vector<8x8xf32>, vector<8x8xf32> -> vector<8x8xf32>
    %35 = vector.extract_strided_slice %19 {offsets = [0, 8], sizes = [8, 8], strides = [1, 1]} : vector<8x32xf32> to vector<8x8xf32>
    %36 = vector.extract_strided_slice %16 {offsets = [0, 8], sizes = [8, 8], strides = [1, 1]} : vector<8x32xf32> to vector<8x8xf32>
    %cst_24 = arith.constant dense<0.000000e+00> : vector<8x8xf32>
    %37 = tpu.matmul %35, %36, %cst_24 {dimension_numbers = #tpu.dot_dimension_numbers<[1], [1], [0], [0], [0, 0, 1, 0], [], []>} : vector<8x8xf32>, vector<8x8xf32>, vector<8x8xf32> -> vector<8x8xf32>
    %cst_25 = arith.constant dense<0xFF800000> : vector<8xf32>
    %38 = vector.multi_reduction <maximumf>, %37, %cst_25 [1] : vector<8x8xf32> to vector<8xf32>
    %39 = vector.shape_cast %38 : vector<8xf32> to vector<8x1xf32>
    %40 = vector.broadcast %39 : vector<8x1xf32> to vector<8x8xf32>
    %41 = arith.subf %37, %40 : vector<8x8xf32>
    %42 = math.exp %41 : vector<8x8xf32>
    %cst_26 = arith.constant dense<0.000000e+00> : vector<8xf32>
    %43 = vector.multi_reduction <add>, %42, %cst_26 [1] : vector<8x8xf32> to vector<8xf32>
    %44 = vector.shape_cast %43 : vector<8xf32> to vector<8x1xf32>
    %45 = tpu.reciprocal %44 {approx = true} : vector<8x1xf32> -> vector<8x1xf32>
    %46 = vector.broadcast %45 : vector<8x1xf32> to vector<8x8xf32>
    %47 = arith.mulf %42, %46 : vector<8x8xf32>
    %48 = vector.extract_strided_slice %17 {offsets = [0, 8], sizes = [8, 8], strides = [1, 1]} : vector<8x32xf32> to vector<8x8xf32>
    %cst_27 = arith.constant dense<0.000000e+00> : vector<8x8xf32>
    %49 = tpu.matmul %47, %48, %cst_27 {dimension_numbers = #tpu.dot_dimension_numbers<[1], [0], [0], [1], [0, 0, 1, 1], [], []>} : vector<8x8xf32>, vector<8x8xf32>, vector<8x8xf32> -> vector<8x8xf32>
    %50 = vector.extract_strided_slice %19 {offsets = [0, 16], sizes = [8, 8], strides = [1, 1]} : vector<8x32xf32> to vector<8x8xf32>
    %51 = vector.extract_strided_slice %16 {offsets = [0, 16], sizes = [8, 8], strides = [1, 1]} : vector<8x32xf32> to vector<8x8xf32>
    %cst_28 = arith.constant dense<0.000000e+00> : vector<8x8xf32>
    %52 = tpu.matmul %50, %51, %cst_28 {dimension_numbers = #tpu.dot_dimension_numbers<[1], [1], [0], [0], [0, 0, 1, 0], [], []>} : vector<8x8xf32>, vector<8x8xf32>, vector<8x8xf32> -> vector<8x8xf32>
    %cst_29 = arith.constant dense<0xFF800000> : vector<8xf32>
    %53 = vector.multi_reduction <maximumf>, %52, %cst_29 [1] : vector<8x8xf32> to vector<8xf32>
    %54 = vector.shape_cast %53 : vector<8xf32> to vector<8x1xf32>
    %55 = vector.broadcast %54 : vector<8x1xf32> to vector<8x8xf32>
    %56 = arith.subf %52, %55 : vector<8x8xf32>
    %57 = math.exp %56 : vector<8x8xf32>
    %cst_30 = arith.constant dense<0.000000e+00> : vector<8xf32>
    %58 = vector.multi_reduction <add>, %57, %cst_30 [1] : vector<8x8xf32> to vector<8xf32>
    %59 = vector.shape_cast %58 : vector<8xf32> to vector<8x1xf32>
    %60 = tpu.reciprocal %59 {approx = true} : vector<8x1xf32> -> vector<8x1xf32>
    %61 = vector.broadcast %60 : vector<8x1xf32> to vector<8x8xf32>
    %62 = arith.mulf %57, %61 : vector<8x8xf32>
    %63 = vector.extract_strided_slice %17 {offsets = [0, 16], sizes = [8, 8], strides = [1, 1]} : vector<8x32xf32> to vector<8x8xf32>
    %cst_31 = arith.constant dense<0.000000e+00> : vector<8x8xf32>
    %64 = tpu.matmul %62, %63, %cst_31 {dimension_numbers = #tpu.dot_dimension_numbers<[1], [0], [0], [1], [0, 0, 1, 1], [], []>} : vector<8x8xf32>, vector<8x8xf32>, vector<8x8xf32> -> vector<8x8xf32>
    %65 = vector.extract_strided_slice %19 {offsets = [0, 24], sizes = [8, 8], strides = [1, 1]} : vector<8x32xf32> to vector<8x8xf32>
    %66 = vector.extract_strided_slice %16 {offsets = [0, 24], sizes = [8, 8], strides = [1, 1]} : vector<8x32xf32> to vector<8x8xf32>
    %cst_32 = arith.constant dense<0.000000e+00> : vector<8x8xf32>
    %67 = tpu.matmul %65, %66, %cst_32 {dimension_numbers = #tpu.dot_dimension_numbers<[1], [1], [0], [0], [0, 0, 1, 0], [], []>} : vector<8x8xf32>, vector<8x8xf32>, vector<8x8xf32> -> vector<8x8xf32>
    %cst_33 = arith.constant dense<0xFF800000> : vector<8xf32>
    %68 = vector.multi_reduction <maximumf>, %67, %cst_33 [1] : vector<8x8xf32> to vector<8xf32>
    %69 = vector.shape_cast %68 : vector<8xf32> to vector<8x1xf32>
    %70 = vector.broadcast %69 : vector<8x1xf32> to vector<8x8xf32>
    %71 = arith.subf %67, %70 : vector<8x8xf32>
    %72 = math.exp %71 : vector<8x8xf32>
    %cst_34 = arith.constant dense<0.000000e+00> : vector<8xf32>
    %73 = vector.multi_reduction <add>, %72, %cst_34 [1] : vector<8x8xf32> to vector<8xf32>
    %74 = vector.shape_cast %73 : vector<8xf32> to vector<8x1xf32>
    %75 = tpu.reciprocal %74 {approx = true} : vector<8x1xf32> -> vector<8x1xf32>
    %76 = vector.broadcast %75 : vector<8x1xf32> to vector<8x8xf32>
    %77 = arith.mulf %72, %76 : vector<8x8xf32>
    %78 = vector.extract_strided_slice %17 {offsets = [0, 24], sizes = [8, 8], strides = [1, 1]} : vector<8x32xf32> to vector<8x8xf32>
    %cst_35 = arith.constant dense<0.000000e+00> : vector<8x8xf32>
    %79 = tpu.matmul %77, %78, %cst_35 {dimension_numbers = #tpu.dot_dimension_numbers<[1], [0], [0], [1], [0, 0, 1, 1], [], []>} : vector<8x8xf32>, vector<8x8xf32>, vector<8x8xf32> -> vector<8x8xf32>
    %80 = tpu.concatenate %34, %49, %64, %79 in 1 : vector<8x8xf32>, vector<8x8xf32>, vector<8x8xf32>, vector<8x8xf32> -> vector<8x32xf32>
    %cst_36 = arith.constant dense<0.000000e+00> : vector<8x32xf32>
    %81 = tpu.matmul %80, %10, %cst_36 {dimension_numbers = #tpu.dot_dimension_numbers<[1], [0], [0], [1], [0, 0, 1, 1], [], []>} : vector<8x32xf32>, vector<32x32xf32>, vector<8x32xf32> -> vector<8x32xf32>
    %82 = vector.broadcast %11 : vector<1x32xf32> to vector<8x32xf32>
    %83 = arith.addf %81, %82 : vector<8x32xf32>
    %84 = arith.addf %5, %83 : vector<8x32xf32>
    %cst_37 = arith.constant dense<0.000000e+00> : vector<8xf32>
    %85 = vector.multi_reduction <add>, %84, %cst_37 [1] : vector<8x32xf32> to vector<8xf32>
    %86 = vector.shape_cast %85 : vector<8xf32> to vector<8x1xf32>
    %cst_38 = arith.constant dense<0.000000e+00> : vector<1xf32>
    %87 = vector.multi_reduction <add>, %86, %cst_38 [0] : vector<8x1xf32> to vector<1xf32>
    %88 = vector.shape_cast %87 : vector<1xf32> to vector<1x1xf32>
    %cst_39 = arith.constant 3.906250e-03 : f32
    %89 = vector.broadcast %cst_39 : f32 to vector<1x1xf32>
    %90 = arith.mulf %88, %89 : vector<1x1xf32>
    %91 = vector.broadcast %90 : vector<1x1xf32> to vector<8x32xf32>
    %92 = arith.subf %84, %91 : vector<8x32xf32>
    %93 = arith.mulf %92, %92 : vector<8x32xf32>
    %cst_40 = arith.constant dense<0.000000e+00> : vector<8xf32>
    %94 = vector.multi_reduction <add>, %93, %cst_40 [1] : vector<8x32xf32> to vector<8xf32>
    %95 = vector.shape_cast %94 : vector<8xf32> to vector<8x1xf32>
    %cst_41 = arith.constant dense<0.000000e+00> : vector<1xf32>
    %96 = vector.multi_reduction <add>, %95, %cst_41 [0] : vector<8x1xf32> to vector<1xf32>
    %97 = vector.shape_cast %96 : vector<1xf32> to vector<1x1xf32>
    %cst_42 = arith.constant 3.906250e-03 : f32
    %98 = vector.broadcast %cst_42 : f32 to vector<1x1xf32>
    %99 = arith.mulf %97, %98 : vector<1x1xf32>
    %cst_43 = arith.constant 9.99999974E-6 : f32
    %100 = vector.broadcast %cst_43 : f32 to vector<1x1xf32>
    %101 = arith.addf %99, %100 : vector<1x1xf32>
    %102 = math.rsqrt %101 : vector<1x1xf32>
    %103 = vector.broadcast %102 : vector<1x1xf32> to vector<8x32xf32>
    %104 = arith.mulf %92, %103 : vector<8x32xf32>
    %105 = arith.mulf %104, %0 : vector<8x32xf32>
    %106 = arith.addf %105, %1 : vector<8x32xf32>
    %c0_44 = arith.constant 0 : index
    %c0_45 = arith.constant 0 : index
    %107 = vector.load %arg8[%c0_44, %c0_45] : memref<32x96xf32, #tpu.memory_space<vmem>>, vector<32x96xf32>
    %c0_46 = arith.constant 0 : index
    %c0_47 = arith.constant 0 : index
    %108 = vector.load %arg9[%c0_46, %c0_47] : memref<1x96xf32, #tpu.memory_space<vmem>>, vector<1x96xf32>
    %c0_48 = arith.constant 0 : index
    %c0_49 = arith.constant 0 : index
    %109 = vector.load %arg10[%c0_48, %c0_49] : memref<32x32xf32, #tpu.memory_space<vmem>>, vector<32x32xf32>
    %c0_50 = arith.constant 0 : index
    %c0_51 = arith.constant 0 : index
    %110 = vector.load %arg11[%c0_50, %c0_51] : memref<1x32xf32, #tpu.memory_space<vmem>>, vector<1x32xf32>
    %111 = vector.extract_strided_slice %107 {offsets = [0, 0], sizes = [32, 32], strides = [1, 1]} : vector<32x96xf32> to vector<32x32xf32>
    %cst_52 = arith.constant dense<0.000000e+00> : vector<8x32xf32>
    %112 = tpu.matmul %7, %111, %cst_52 {dimension_numbers = #tpu.dot_dimension_numbers<[1], [0], [0], [1], [0, 0, 1, 1], [], []>} : vector<8x32xf32>, vector<32x32xf32>, vector<8x32xf32> -> vector<8x32xf32>
    %113 = vector.extract_strided_slice %108 {offsets = [0, 0], sizes = [1, 32], strides = [1, 1]} : vector<1x96xf32> to vector<1x32xf32>
    %114 = vector.broadcast %113 : vector<1x32xf32> to vector<8x32xf32>
    %115 = arith.addf %112, %114 : vector<8x32xf32>
    %116 = vector.extract_strided_slice %107 {offsets = [0, 32], sizes = [32, 64], strides = [1, 1]} : vector<32x96xf32> to vector<32x64xf32>
    %cst_53 = arith.constant dense<0.000000e+00> : vector<8x64xf32>
    %117 = tpu.matmul %106, %116, %cst_53 {dimension_numbers = #tpu.dot_dimension_numbers<[1], [0], [0], [1], [0, 0, 1, 1], [], []>} : vector<8x32xf32>, vector<32x64xf32>, vector<8x64xf32> -> vector<8x64xf32>
    %118 = vector.extract_strided_slice %108 {offsets = [0, 32], sizes = [1, 64], strides = [1, 1]} : vector<1x96xf32> to vector<1x64xf32>
    %119 = vector.broadcast %118 : vector<1x64xf32> to vector<8x64xf32>
    %120 = arith.addf %117, %119 : vector<8x64xf32>
    %121 = vector.extract_strided_slice %120 {offsets = [0, 0], sizes = [8, 32], strides = [1, 1]} : vector<8x64xf32> to vector<8x32xf32>
    %122 = vector.extract_strided_slice %120 {offsets = [0, 32], sizes = [8, 32], strides = [1, 1]} : vector<8x64xf32> to vector<8x32xf32>
    %cst_54 = arith.constant 0.353553385 : f32
    %123 = vector.broadcast %cst_54 : f32 to vector<8x32xf32>
    %124 = arith.mulf %115, %123 : vector<8x32xf32>
    %125 = vector.extract_strided_slice %124 {offsets = [0, 0], sizes = [8, 8], strides = [1, 1]} : vector<8x32xf32> to vector<8x8xf32>
    %126 = vector.extract_strided_slice %121 {offsets = [0, 0], sizes = [8, 8], strides = [1, 1]} : vector<8x32xf32> to vector<8x8xf32>
    %cst_55 = arith.constant dense<0.000000e+00> : vector<8x8xf32>
    %127 = tpu.matmul %125, %126, %cst_55 {dimension_numbers = #tpu.dot_dimension_numbers<[1], [1], [0], [0], [0, 0, 1, 0], [], []>} : vector<8x8xf32>, vector<8x8xf32>, vector<8x8xf32> -> vector<8x8xf32>
    %cst_56 = arith.constant dense<0xFF800000> : vector<8xf32>
    %128 = vector.multi_reduction <maximumf>, %127, %cst_56 [1] : vector<8x8xf32> to vector<8xf32>
    %129 = vector.shape_cast %128 : vector<8xf32> to vector<8x1xf32>
    %130 = vector.broadcast %129 : vector<8x1xf32> to vector<8x8xf32>
    %131 = arith.subf %127, %130 : vector<8x8xf32>
    %132 = math.exp %131 : vector<8x8xf32>
    %cst_57 = arith.constant dense<0.000000e+00> : vector<8xf32>
    %133 = vector.multi_reduction <add>, %132, %cst_57 [1] : vector<8x8xf32> to vector<8xf32>
    %134 = vector.shape_cast %133 : vector<8xf32> to vector<8x1xf32>
    %135 = tpu.reciprocal %134 {approx = true} : vector<8x1xf32> -> vector<8x1xf32>
    %136 = vector.broadcast %135 : vector<8x1xf32> to vector<8x8xf32>
    %137 = arith.mulf %132, %136 : vector<8x8xf32>
    %138 = vector.extract_strided_slice %122 {offsets = [0, 0], sizes = [8, 8], strides = [1, 1]} : vector<8x32xf32> to vector<8x8xf32>
    %cst_58 = arith.constant dense<0.000000e+00> : vector<8x8xf32>
    %139 = tpu.matmul %137, %138, %cst_58 {dimension_numbers = #tpu.dot_dimension_numbers<[1], [0], [0], [1], [0, 0, 1, 1], [], []>} : vector<8x8xf32>, vector<8x8xf32>, vector<8x8xf32> -> vector<8x8xf32>
    %140 = vector.extract_strided_slice %124 {offsets = [0, 8], sizes = [8, 8], strides = [1, 1]} : vector<8x32xf32> to vector<8x8xf32>
    %141 = vector.extract_strided_slice %121 {offsets = [0, 8], sizes = [8, 8], strides = [1, 1]} : vector<8x32xf32> to vector<8x8xf32>
    %cst_59 = arith.constant dense<0.000000e+00> : vector<8x8xf32>
    %142 = tpu.matmul %140, %141, %cst_59 {dimension_numbers = #tpu.dot_dimension_numbers<[1], [1], [0], [0], [0, 0, 1, 0], [], []>} : vector<8x8xf32>, vector<8x8xf32>, vector<8x8xf32> -> vector<8x8xf32>
    %cst_60 = arith.constant dense<0xFF800000> : vector<8xf32>
    %143 = vector.multi_reduction <maximumf>, %142, %cst_60 [1] : vector<8x8xf32> to vector<8xf32>
    %144 = vector.shape_cast %143 : vector<8xf32> to vector<8x1xf32>
    %145 = vector.broadcast %144 : vector<8x1xf32> to vector<8x8xf32>
    %146 = arith.subf %142, %145 : vector<8x8xf32>
    %147 = math.exp %146 : vector<8x8xf32>
    %cst_61 = arith.constant dense<0.000000e+00> : vector<8xf32>
    %148 = vector.multi_reduction <add>, %147, %cst_61 [1] : vector<8x8xf32> to vector<8xf32>
    %149 = vector.shape_cast %148 : vector<8xf32> to vector<8x1xf32>
    %150 = tpu.reciprocal %149 {approx = true} : vector<8x1xf32> -> vector<8x1xf32>
    %151 = vector.broadcast %150 : vector<8x1xf32> to vector<8x8xf32>
    %152 = arith.mulf %147, %151 : vector<8x8xf32>
    %153 = vector.extract_strided_slice %122 {offsets = [0, 8], sizes = [8, 8], strides = [1, 1]} : vector<8x32xf32> to vector<8x8xf32>
    %cst_62 = arith.constant dense<0.000000e+00> : vector<8x8xf32>
    %154 = tpu.matmul %152, %153, %cst_62 {dimension_numbers = #tpu.dot_dimension_numbers<[1], [0], [0], [1], [0, 0, 1, 1], [], []>} : vector<8x8xf32>, vector<8x8xf32>, vector<8x8xf32> -> vector<8x8xf32>
    %155 = vector.extract_strided_slice %124 {offsets = [0, 16], sizes = [8, 8], strides = [1, 1]} : vector<8x32xf32> to vector<8x8xf32>
    %156 = vector.extract_strided_slice %121 {offsets = [0, 16], sizes = [8, 8], strides = [1, 1]} : vector<8x32xf32> to vector<8x8xf32>
    %cst_63 = arith.constant dense<0.000000e+00> : vector<8x8xf32>
    %157 = tpu.matmul %155, %156, %cst_63 {dimension_numbers = #tpu.dot_dimension_numbers<[1], [1], [0], [0], [0, 0, 1, 0], [], []>} : vector<8x8xf32>, vector<8x8xf32>, vector<8x8xf32> -> vector<8x8xf32>
    %cst_64 = arith.constant dense<0xFF800000> : vector<8xf32>
    %158 = vector.multi_reduction <maximumf>, %157, %cst_64 [1] : vector<8x8xf32> to vector<8xf32>
    %159 = vector.shape_cast %158 : vector<8xf32> to vector<8x1xf32>
    %160 = vector.broadcast %159 : vector<8x1xf32> to vector<8x8xf32>
    %161 = arith.subf %157, %160 : vector<8x8xf32>
    %162 = math.exp %161 : vector<8x8xf32>
    %cst_65 = arith.constant dense<0.000000e+00> : vector<8xf32>
    %163 = vector.multi_reduction <add>, %162, %cst_65 [1] : vector<8x8xf32> to vector<8xf32>
    %164 = vector.shape_cast %163 : vector<8xf32> to vector<8x1xf32>
    %165 = tpu.reciprocal %164 {approx = true} : vector<8x1xf32> -> vector<8x1xf32>
    %166 = vector.broadcast %165 : vector<8x1xf32> to vector<8x8xf32>
    %167 = arith.mulf %162, %166 : vector<8x8xf32>
    %168 = vector.extract_strided_slice %122 {offsets = [0, 16], sizes = [8, 8], strides = [1, 1]} : vector<8x32xf32> to vector<8x8xf32>
    %cst_66 = arith.constant dense<0.000000e+00> : vector<8x8xf32>
    %169 = tpu.matmul %167, %168, %cst_66 {dimension_numbers = #tpu.dot_dimension_numbers<[1], [0], [0], [1], [0, 0, 1, 1], [], []>} : vector<8x8xf32>, vector<8x8xf32>, vector<8x8xf32> -> vector<8x8xf32>
    %170 = vector.extract_strided_slice %124 {offsets = [0, 24], sizes = [8, 8], strides = [1, 1]} : vector<8x32xf32> to vector<8x8xf32>
    %171 = vector.extract_strided_slice %121 {offsets = [0, 24], sizes = [8, 8], strides = [1, 1]} : vector<8x32xf32> to vector<8x8xf32>
    %cst_67 = arith.constant dense<0.000000e+00> : vector<8x8xf32>
    %172 = tpu.matmul %170, %171, %cst_67 {dimension_numbers = #tpu.dot_dimension_numbers<[1], [1], [0], [0], [0, 0, 1, 0], [], []>} : vector<8x8xf32>, vector<8x8xf32>, vector<8x8xf32> -> vector<8x8xf32>
    %cst_68 = arith.constant dense<0xFF800000> : vector<8xf32>
    %173 = vector.multi_reduction <maximumf>, %172, %cst_68 [1] : vector<8x8xf32> to vector<8xf32>
    %174 = vector.shape_cast %173 : vector<8xf32> to vector<8x1xf32>
    %175 = vector.broadcast %174 : vector<8x1xf32> to vector<8x8xf32>
    %176 = arith.subf %172, %175 : vector<8x8xf32>
    %177 = math.exp %176 : vector<8x8xf32>
    %cst_69 = arith.constant dense<0.000000e+00> : vector<8xf32>
    %178 = vector.multi_reduction <add>, %177, %cst_69 [1] : vector<8x8xf32> to vector<8xf32>
    %179 = vector.shape_cast %178 : vector<8xf32> to vector<8x1xf32>
    %180 = tpu.reciprocal %179 {approx = true} : vector<8x1xf32> -> vector<8x1xf32>
    %181 = vector.broadcast %180 : vector<8x1xf32> to vector<8x8xf32>
    %182 = arith.mulf %177, %181 : vector<8x8xf32>
    %183 = vector.extract_strided_slice %122 {offsets = [0, 24], sizes = [8, 8], strides = [1, 1]} : vector<8x32xf32> to vector<8x8xf32>
    %cst_70 = arith.constant dense<0.000000e+00> : vector<8x8xf32>
    %184 = tpu.matmul %182, %183, %cst_70 {dimension_numbers = #tpu.dot_dimension_numbers<[1], [0], [0], [1], [0, 0, 1, 1], [], []>} : vector<8x8xf32>, vector<8x8xf32>, vector<8x8xf32> -> vector<8x8xf32>
    %185 = tpu.concatenate %139, %154, %169, %184 in 1 : vector<8x8xf32>, vector<8x8xf32>, vector<8x8xf32>, vector<8x8xf32> -> vector<8x32xf32>
    %cst_71 = arith.constant dense<0.000000e+00> : vector<8x32xf32>
    %186 = tpu.matmul %185, %109, %cst_71 {dimension_numbers = #tpu.dot_dimension_numbers<[1], [0], [0], [1], [0, 0, 1, 1], [], []>} : vector<8x32xf32>, vector<32x32xf32>, vector<8x32xf32> -> vector<8x32xf32>
    %187 = vector.broadcast %110 : vector<1x32xf32> to vector<8x32xf32>
    %188 = arith.addf %186, %187 : vector<8x32xf32>
    %189 = arith.addf %106, %188 : vector<8x32xf32>
    %cst_72 = arith.constant dense<0.000000e+00> : vector<8xf32>
    %190 = vector.multi_reduction <add>, %189, %cst_72 [1] : vector<8x32xf32> to vector<8xf32>
    %191 = vector.shape_cast %190 : vector<8xf32> to vector<8x1xf32>
    %cst_73 = arith.constant dense<0.000000e+00> : vector<1xf32>
    %192 = vector.multi_reduction <add>, %191, %cst_73 [0] : vector<8x1xf32> to vector<1xf32>
    %193 = vector.shape_cast %192 : vector<1xf32> to vector<1x1xf32>
    %cst_74 = arith.constant 3.906250e-03 : f32
    %194 = vector.broadcast %cst_74 : f32 to vector<1x1xf32>
    %195 = arith.mulf %193, %194 : vector<1x1xf32>
    %196 = vector.broadcast %195 : vector<1x1xf32> to vector<8x32xf32>
    %197 = arith.subf %189, %196 : vector<8x32xf32>
    %198 = arith.mulf %197, %197 : vector<8x32xf32>
    %cst_75 = arith.constant dense<0.000000e+00> : vector<8xf32>
    %199 = vector.multi_reduction <add>, %198, %cst_75 [1] : vector<8x32xf32> to vector<8xf32>
    %200 = vector.shape_cast %199 : vector<8xf32> to vector<8x1xf32>
    %cst_76 = arith.constant dense<0.000000e+00> : vector<1xf32>
    %201 = vector.multi_reduction <add>, %200, %cst_76 [0] : vector<8x1xf32> to vector<1xf32>
    %202 = vector.shape_cast %201 : vector<1xf32> to vector<1x1xf32>
    %cst_77 = arith.constant 3.906250e-03 : f32
    %203 = vector.broadcast %cst_77 : f32 to vector<1x1xf32>
    %204 = arith.mulf %202, %203 : vector<1x1xf32>
    %cst_78 = arith.constant 9.99999974E-6 : f32
    %205 = vector.broadcast %cst_78 : f32 to vector<1x1xf32>
    %206 = arith.addf %204, %205 : vector<1x1xf32>
    %207 = math.rsqrt %206 : vector<1x1xf32>
    %208 = vector.broadcast %207 : vector<1x1xf32> to vector<8x32xf32>
    %209 = arith.mulf %197, %208 : vector<8x32xf32>
    %210 = arith.mulf %209, %0 : vector<8x32xf32>
    %211 = arith.addf %210, %1 : vector<8x32xf32>
    %c0_79 = arith.constant 0 : index
    %c0_80 = arith.constant 0 : index
    %212 = vector.load %arg12[%c0_79, %c0_80] : memref<32x128xf32, #tpu.memory_space<vmem>>, vector<32x128xf32>
    %cst_81 = arith.constant dense<0.000000e+00> : vector<8x128xf32>
    %213 = tpu.matmul %211, %212, %cst_81 {dimension_numbers = #tpu.dot_dimension_numbers<[1], [0], [0], [1], [0, 0, 1, 1], [], []>} : vector<8x32xf32>, vector<32x128xf32>, vector<8x128xf32> -> vector<8x128xf32>
    %c0_82 = arith.constant 0 : index
    %c0_83 = arith.constant 0 : index
    %214 = vector.load %arg13[%c0_82, %c0_83] : memref<1x128xf32, #tpu.memory_space<vmem>>, vector<1x128xf32>
    %215 = vector.broadcast %214 : vector<1x128xf32> to vector<8x128xf32>
    %216 = arith.addf %213, %215 : vector<8x128xf32>
    %cst_84 = arith.constant 0.000000e+00 : f32
    %217 = vector.broadcast %cst_84 : f32 to vector<8x128xf32>
    %218 = arith.cmpf ogt, %216, %217 : vector<8x128xf32>
    %cst_85 = arith.constant 0.00999999977 : f32
    %219 = vector.broadcast %cst_85 : f32 to vector<8x128xf32>
    %220 = arith.mulf %219, %216 : vector<8x128xf32>
    %221 = arith.select %218, %216, %220 : vector<8x128xi1>, vector<8x128xf32>
    %c0_86 = arith.constant 0 : index
    %c0_87 = arith.constant 0 : index
    %222 = vector.load %arg14[%c0_86, %c0_87] : memref<128x32xf32, #tpu.memory_space<vmem>>, vector<128x32xf32>
    %cst_88 = arith.constant dense<0.000000e+00> : vector<8x32xf32>
    %223 = tpu.matmul %221, %222, %cst_88 {dimension_numbers = #tpu.dot_dimension_numbers<[1], [0], [0], [1], [0, 0, 1, 1], [], []>} : vector<8x128xf32>, vector<128x32xf32>, vector<8x32xf32> -> vector<8x32xf32>
    %c0_89 = arith.constant 0 : index
    %c0_90 = arith.constant 0 : index
    %224 = vector.load %arg15[%c0_89, %c0_90] : memref<1x32xf32, #tpu.memory_space<vmem>>, vector<1x32xf32>
    %225 = vector.broadcast %224 : vector<1x32xf32> to vector<8x32xf32>
    %226 = arith.addf %223, %225 : vector<8x32xf32>
    %227 = arith.addf %211, %226 : vector<8x32xf32>
    %cst_91 = arith.constant dense<0.000000e+00> : vector<8xf32>
    %228 = vector.multi_reduction <add>, %227, %cst_91 [1] : vector<8x32xf32> to vector<8xf32>
    %229 = vector.shape_cast %228 : vector<8xf32> to vector<8x1xf32>
    %cst_92 = arith.constant dense<0.000000e+00> : vector<1xf32>
    %230 = vector.multi_reduction <add>, %229, %cst_92 [0] : vector<8x1xf32> to vector<1xf32>
    %231 = vector.shape_cast %230 : vector<1xf32> to vector<1x1xf32>
    %cst_93 = arith.constant 3.906250e-03 : f32
    %232 = vector.broadcast %cst_93 : f32 to vector<1x1xf32>
    %233 = arith.mulf %231, %232 : vector<1x1xf32>
    %234 = vector.broadcast %233 : vector<1x1xf32> to vector<8x32xf32>
    %235 = arith.subf %227, %234 : vector<8x32xf32>
    %236 = arith.mulf %235, %235 : vector<8x32xf32>
    %cst_94 = arith.constant dense<0.000000e+00> : vector<8xf32>
    %237 = vector.multi_reduction <add>, %236, %cst_94 [1] : vector<8x32xf32> to vector<8xf32>
    %238 = vector.shape_cast %237 : vector<8xf32> to vector<8x1xf32>
    %cst_95 = arith.constant dense<0.000000e+00> : vector<1xf32>
    %239 = vector.multi_reduction <add>, %238, %cst_95 [0] : vector<8x1xf32> to vector<1xf32>
    %240 = vector.shape_cast %239 : vector<1xf32> to vector<1x1xf32>
    %cst_96 = arith.constant 3.906250e-03 : f32
    %241 = vector.broadcast %cst_96 : f32 to vector<1x1xf32>
    %242 = arith.mulf %240, %241 : vector<1x1xf32>
    %cst_97 = arith.constant 9.99999974E-6 : f32
    %243 = vector.broadcast %cst_97 : f32 to vector<1x1xf32>
    %244 = arith.addf %242, %243 : vector<1x1xf32>
    %245 = math.rsqrt %244 : vector<1x1xf32>
    %246 = vector.broadcast %245 : vector<1x1xf32> to vector<8x32xf32>
    %247 = arith.mulf %235, %246 : vector<8x32xf32>
    %248 = arith.mulf %247, %0 : vector<8x32xf32>
    %249 = arith.addf %248, %1 : vector<8x32xf32>
    %c0_98 = arith.constant 0 : index
    %c0_99 = arith.constant 0 : index
    %c0_100 = arith.constant 0 : index
    %250 = vector.load %arg18[%c0_98, %c0_99, %c0_100] : memref<1x8x32xf32, #tpu.memory_space<vmem>>, vector<1x8x32xf32>
    %251 = vector.shape_cast %250 : vector<1x8x32xf32> to vector<8x32xf32>
    %252 = vector.shape_cast %249 : vector<8x32xf32> to vector<1x8x32xf32>
    tpu.vector_store %arg18[%c0_98, %c0_99, %c0_100], %252 {strides = array<i32>} : memref<1x8x32xf32, #tpu.memory_space<vmem>>, vector<1x8x32xf32>,
    return
  }
  func.func @transform_0(%arg0: i32) -> (i32, i32, i32) {
    %c0_i32 = arith.constant 0 : i32
    %c0_i32_0 = arith.constant 0 : i32
    %c0_i32_1 = arith.constant 0 : i32
    return %arg0, %c0_i32, %c0_i32_0 : i32, i32, i32
  }
  func.func @transform_1(%arg0: i32) -> (i32, i32, i32) {
    %c0_i32 = arith.constant 0 : i32
    %c0_i32_0 = arith.constant 0 : i32
    %c0_i32_1 = arith.constant 0 : i32
    return %arg0, %c0_i32, %c0_i32_0 : i32, i32, i32
  }
  func.func @transform_2(%arg0: i32) -> (i32, i32) {
    %c0_i32 = arith.constant 0 : i32
    %c0_i32_0 = arith.constant 0 : i32
    %c0_i32_1 = arith.constant 0 : i32
    return %c0_i32, %c0_i32_0 : i32, i32
  }
  func.func @transform_3(%arg0: i32) -> (i32, i32) {
    %c0_i32 = arith.constant 0 : i32
    %c0_i32_0 = arith.constant 0 : i32
    %c0_i32_1 = arith.constant 0 : i32
    return %c0_i32, %c0_i32_0 : i32, i32
  }
  func.func @transform_4(%arg0: i32) -> (i32, i32) {
    %c0_i32 = arith.constant 0 : i32
    %c0_i32_0 = arith.constant 0 : i32
    %c0_i32_1 = arith.constant 0 : i32
    return %c0_i32, %c0_i32_0 : i32, i32
  }
  func.func @transform_5(%arg0: i32) -> (i32, i32) {
    %c0_i32 = arith.constant 0 : i32
    %c0_i32_0 = arith.constant 0 : i32
    %c0_i32_1 = arith.constant 0 : i32
    return %c0_i32, %c0_i32_0 : i32, i32
  }
  func.func @transform_6(%arg0: i32) -> (i32, i32) {
    %c0_i32 = arith.constant 0 : i32
    %c0_i32_0 = arith.constant 0 : i32
    %c0_i32_1 = arith.constant 0 : i32
    return %c0_i32, %c0_i32_0 : i32, i32
  }
  func.func @transform_7(%arg0: i32) -> (i32, i32) {
    %c0_i32 = arith.constant 0 : i32
    %c0_i32_0 = arith.constant 0 : i32
    %c0_i32_1 = arith.constant 0 : i32
    return %c0_i32, %c0_i32_0 : i32, i32
  }
  func.func @transform_8(%arg0: i32) -> (i32, i32) {
    %c0_i32 = arith.constant 0 : i32
    %c0_i32_0 = arith.constant 0 : i32
    %c0_i32_1 = arith.constant 0 : i32
    return %c0_i32, %c0_i32_0 : i32, i32
  }
  func.func @transform_9(%arg0: i32) -> (i32, i32) {
    %c0_i32 = arith.constant 0 : i32
    %c0_i32_0 = arith.constant 0 : i32
    %c0_i32_1 = arith.constant 0 : i32
    return %c0_i32, %c0_i32_0 : i32, i32
  }
  func.func @transform_10(%arg0: i32) -> (i32, i32) {
    %c0_i32 = arith.constant 0 : i32
    %c0_i32_0 = arith.constant 0 : i32
    %c0_i32_1 = arith.constant 0 : i32
    return %c0_i32, %c0_i32_0 : i32, i32
  }
  func.func @transform_11(%arg0: i32) -> (i32, i32) {
    %c0_i32 = arith.constant 0 : i32
    %c0_i32_0 = arith.constant 0 : i32
    %c0_i32_1 = arith.constant 0 : i32
    return %c0_i32, %c0_i32_0 : i32, i32
  }
  func.func @transform_12(%arg0: i32) -> (i32, i32) {
    %c0_i32 = arith.constant 0 : i32
    %c0_i32_0 = arith.constant 0 : i32
    %c0_i32_1 = arith.constant 0 : i32
    return %c0_i32, %c0_i32_0 : i32, i32
  }
  func.func @transform_13(%arg0: i32) -> (i32, i32) {
    %c0_i32 = arith.constant 0 : i32
    %c0_i32_0 = arith.constant 0 : i32
    %c0_i32_1 = arith.constant 0 : i32
    return %c0_i32, %c0_i32_0 : i32, i32
  }
  func.func @transform_14(%arg0: i32) -> (i32, i32) {
    %c0_i32 = arith.constant 0 : i32
    %c0_i32_0 = arith.constant 0 : i32
    %c0_i32_1 = arith.constant 0 : i32
    return %c0_i32, %c0_i32_0 : i32, i32
  }
  func.func @transform_15(%arg0: i32) -> (i32, i32) {
    %c0_i32 = arith.constant 0 : i32
    %c0_i32_0 = arith.constant 0 : i32
    %c0_i32_1 = arith.constant 0 : i32
    return %c0_i32, %c0_i32_0 : i32, i32
  }
  func.func @transform_16(%arg0: i32) -> (i32, i32) {
    %c0_i32 = arith.constant 0 : i32
    %c0_i32_0 = arith.constant 0 : i32
    %c0_i32_1 = arith.constant 0 : i32
    return %c0_i32, %c0_i32_0 : i32, i32
  }
  func.func @transform_17(%arg0: i32) -> (i32, i32, i32) {
    %c0_i32 = arith.constant 0 : i32
    %c0_i32_0 = arith.constant 0 : i32
    %c0_i32_1 = arith.constant 0 : i32
    return %arg0, %c0_i32, %c0_i32_0 : i32, i32, i32
  }
}

</mosaic_0001>

<bundles_post_ra>
// kernel: decoder_forward.1
= control target key start
LH: loop header
LB: loop body
LE: loop exit
PB: predicated region body
PF: predicated region fallthrough
CT: control target
= control target key end

     0   :  { %s3733_s0 = inlined_call_operand.vmem [shape: f32[2,8,32], index: 0, kind: input, shape index: {}]   ;;  %s3734_s1 = inlined_call_operand.vmem [shape: f32[2,8,32], index: 1, kind: input, shape index: {}]   ;;  %s3735_s2 = inlined_call_operand.vmem [shape: f32[8,32], index: 2, kind: input, shape index: {}]   ;;  %s3736_s3 = inlined_call_operand.vmem [shape: f32[32,96], index: 3, kind: input, shape index: {}]   ;;  %s3737_s4 = inlined_call_operand.vmem [shape: f32[1,96], index: 4, kind: input, shape index: {}]   ;;  %s3738_s5 = inlined_call_operand.vmem [shape: f32[32,32], index: 5, kind: input, shape index: {}]   ;;  %s3739_s6 = inlined_call_operand.vmem [shape: f32[1,32], index: 6, kind: input, shape index: {}]   ;;  %s3740_s7 = inlined_call_operand.vmem [shape: f32[32,96], index: 7, kind: input, shape index: {}]   ;;  %s3741_s8 = inlined_call_operand.vmem [shape: f32[1,96], index: 8, kind: input, shape index: {}]   ;;  %s3742_s9 = inlined_call_operand.vmem [shape: f32[32,32], index: 9, kind: input, shape index: {}]   ;;  %s3743_s10 = inlined_call_operand.vmem [shape: f32[1,32], index: 10, kind: input, shape index: {}]   ;;  %s3744_s11 = inlined_call_operand.vmem [shape: f32[32,128], index: 11, kind: input, shape index: {}]   ;;  %s3745_s12 = inlined_call_operand.vmem [shape: f32[1,128], index: 12, kind: input, shape index: {}]   ;;  %s3746_s13 = inlined_call_operand.vmem [shape: f32[128,32], index: 13, kind: input, shape index: {}]   ;;  %s3747_s14 = inlined_call_operand.vmem [shape: f32[1,32], index: 14, kind: input, shape index: {}]   ;;  %s3748_s15 = inlined_call_operand.vmem [shape: f32[8,32], index: 15, kind: input, shape index: {}]   ;;  %s3749_s16 = inlined_call_operand.vmem [shape: f32[8,32], index: 16, kind: input, shape index: {}]   ;;  %s3750_s17 = inlined_call_operand.hbm [shape: f32[2,8,32], index: 17, kind: output, shape index: {}]  }
   0x1   :  { %3766 = sst [smem:[#allocation9_spill]] %s3733_s0 }
   0x2   :  { %3767 = sst [smem:[#allocation10_spill]] %s3734_s1 }
   0x3   :  { %3768 = sst [smem:[#allocation11_spill]] %s3735_s2 }
   0x4   :  { %3769 = sst [smem:[#allocation12_spill]] %s3736_s3 }
   0x5   :  { %22 = vsyncpa [#allocation3], 0 }
   0x6   :  { %24 = vsyncpa [#allocation3 + $0x1], 0  ;;  %s3268_s24 = smov 0   ;;  %s3270_s25 = smov 0  }
   0x7   :  { %s3272_s26 = smov 0   ;;  %s3274_s27 = smov 0  }
   0x8 LB: > { %3770 = sst [smem:[#allocation5_spill]] %s3155_s26  ;;  %s3289_s28 = sadd.s32 4294967295, %s3159_s27   ;;  %s3159_s27 = sphi %s3274_s27, %s3789_s27   ;;  %s3155_s26 = sphi %s3272_s26, %s3791_s26   ;;  %s3151_s25 = sphi %s3270_s25, %s3793_s25   ;;  %s3147_s24 = sphi %s3268_s24, %s3792_s24  }
   0x9   : > { %s2699_s29 = sadd.s32 4294967294, %s3159_s27   ;;  %s3293_s0 = sadd.s32 1, %s3159_s27  }
   0xa   : > { %3771 = sst [smem:[#allocation6_spill]] %s3293_s0  ;;  %s404_s30 = sadd.s32 1, %s3155_s26 }
   0xb   : > { %s401_s18 = ssub.s32 %s3159_s27, %s3293_s0  ;;  %p414_p0 = scmp.ne.s32.totalorder %s3155_s26, %s3151_s25 }
   0xc   : > { %p402_p1 = scmp.eq.s32.totalorder %s401_s18, 0  ;;  %p415_p2 = scmp.eq.s32.totalorder %s3289_s28, 1 }
   0xd   : > { %p420_p3 = scmp.ne.s32.totalorder %s3151_s25, %s3147_s24  ;;  %p421_p4 = scmp.eq.s32.totalorder %s2699_s29, 1 }
   0xe   : > { %s3304_s19 = scalar_select %p402_p1, %s3155_s26, %s404_s30  }
   0xf   : > { %p3306_p5 = por %p415_p2, %p414_p0  ;;  %p3310_p6 = por %p421_p4, %p420_p3 }
  0x10   : > { %3772 = sst [smem:[#allocation7_spill]] %s3304_s19  ;;  %p2702_p7 = scmp.ge.s32.totalorder %s3159_s27, 1 }
  0x11   : > { %s3774_s20 = scalar_select %p3310_p6, 1, 0 }
  0x12   : > { %p498_p8 = scmp.lt.s32.totalorder %s3159_s27, 3 }
  0x13   : > { %3775 = sst [smem:[#allocation8_spill]] %s3774_s20 }
  0x14   : > { %p499_p9 = pnand %p2702_p7, %p498_p8 }
  0x15   : > { %s3776_s3 = sld [smem:[#allocation12_spill]] (!%p499_p9)  ;;  %p553_p10 = scmp.lt.s32.totalorder (!%p499_p9), %s3289_s28, 1 }
  0x16   : > { %502 = sbr.rel (%p499_p9) target bundleno = 4153 (0x1039), region = 88  ;;  %s3777_s2 = sld [smem:[#allocation11_spill]] (!%p499_p9) }
  0x17   : > { %s3778_s18 = sld [smem:[#allocation9_spill]] (!%p499_p9)  ;;  %s3163_s0 = smov (!%p499_p9), 96  }
  0x18   : > { %s3762_s20 = smov (!%p499_p9), 120   ;;  %s3757_s23 = smov (!%p499_p9), 88  }
  0x19   : > { %s3756_s29 = smov (!%p499_p9), 80   ;;  %s3758_s26 = smov (!%p499_p9), 104  }
  0x1a   : > { %s3170_s19 = smov (!%p499_p9), 56  }
  0x1b   : > { %v570_v0 = vld [vmem:[%s3776_s3 + $0x18] sm:$0xff]  ;;  %v3161_v1 = vmov 0.0   ;;  %v569_v2 = vld [vmem:[%s3776_s3 + $0x10] sm:$0xff]  ;;  %vm3162_vm0 = vmmov 0   ;;  %s3327_s30 = scalar_select %p553_p10, %s3289_s28, 1  ;;  %v568_v3 = vld [vmem:[%s3776_s3 + $0x8] sm:$0xff] }
  0x1c   : > { %2825 = vmatprep.subr.mxu1 %v3161_v1  ;;  %2833 = vmatprep.mubr.msk.f32.mxu1 %vm3162_vm0, %v3161_v1  ;;  %v564_v4 = vld [vmem:[%s3777_s2] sm:$0xff]  ;;  %vm583_vm1 = vcmask 261120   ;;  %vm661_vm2 = vcmask 64512   ;;  %vm1332_vm3 = vcmask 130048   ;;  %vm1334_vm4 = vcmask 195584  }
  0x1d   : > { %2826 = vmatpush3.msra.mxu1 %v570_v0  ;;  %2846 = vmatprep.subr.mxu0 %v3161_v1  ;;  %s2704_s22 = sshll.u32 %s3327_s30, 3  ;;  %v567_v5 = vld [vmem:[%s3776_s3] sm:$0xff]  ;;  %s3785_s30 = smov 72  }
  0x1e   : > { %2827 = vmatprep.subr.mxu1 %v3161_v1  ;;  %2848 = vmatprep.mubr.msk.f32.mxu0 %vm3162_vm0, %v3161_v1  ;;  %s556_s21 = scalar_lea.vmem %s3778_s18, %s2704_s22  ;;  %v2706_v8 = vld [vmem:[%s3737_s4] ss:$0 sm:$0xff]  ;;  %s3760_s18 = smov 112  }
  0x1f   : > { %2828 = vmatpush3.msra.mxu1 %v569_v2  ;;  %v563_v6 = vld [vmem:[%s556_s21] sm:$0xff]  ;;  %s3755_s21 = smov 72  }
  0x20   : > { %2829 = vmatprep.subr.mxu1 %v3161_v1  ;;  %v3350_v7 = vadd.f32 %v564_v4, %v563_v6 }
  0x21   : > { %2830 = vmatpush3.msra.mxu1 %v568_v3 }
  0x22   : > { %2831 = vmatprep.subr.mxu1 %v3161_v1 }
  0x23   : > { %2832 = vmatpush3.msra.mxu1 %v567_v5  ;;  %v575_v5 = vld [vmem:[%s3738_s5 + $0x18] sm:$0xff] }
  0x24   : > { %2834 = vmatmul.mubr.msk.f32.vlgmr.msra.gmra.mxu1 %vm583_vm1, %v3350_v7  ;;  %2836 = vmatprep.subr.mxu1 %v3161_v1 }
  0x25   : > { %2838 = vmatprep.mubr.msk.f32.mxu1 %vm3162_vm0, %v3161_v1 }
  0xe4   : > { %v653_v9 = vpop.f32.mrf.mxu1 }
  0xe5   : > { %v3360_v10 = vadd.f32 %v2706_v8, %v653_v9 }
  0xe6   : > { %v2835_v11 = vpop.f32.mrf.mxu1 }
  0xe7   : > { %659 = vrot.lane.b32.xlu0 %v3360_v10, %s3163_s0  ;;  %v657_v12 = vmul.f32 0.35355338, %v3360_v10  ;;  %v574_v11 = vld [vmem:[%s3738_s5 + $0x10] sm:$0xff] }
  0xe9   : > { %824 = vrot.lane.b32.xlu1 %v657_v12, %s3762_s20  ;;  %s3764_s20 = smov 24  }
  0xeb   : > { %826 = vrot.lane.b32.xlu0 %v3360_v10, %s3757_s23  ;;  %s3765_s23 = smov 16  }
  0xed   : > { %991 = vrot.lane.b32.xlu1 %v3360_v10, %s3756_s29  ;;  %s3173_s29 = smov 40  }
  0xef   : > { %989 = vrot.lane.b32.xlu0 %v657_v12, %s3760_s18  ;;  %s3779_s18 = sld [smem:[#allocation10_spill]] }
  0xf1   : > { %1156 = vrot.lane.b32.xlu1 %v3360_v10, %s3755_s21  ;;  %s3172_s21 = smov 48  }
  0xf3   : > { %1154 = vrot.lane.b32.xlu0 %v657_v12, %s3758_s26 }
  0xf5   : > { %s560_s26 = scalar_lea.vmem %s3779_s18, %s2704_s22  ;;  %s3780_s18 = smov 120  }
  0xf6   : > { %s3787_s22 = smov 24  }
 0x159   : > { %v660_v13 = vpop.permute.xlu0 %659 }
 0x15a   : > { %2837 = vmatpush3.xpose.msk.msra.mxu1 %vm661_vm2, %v660_v13  ;;  %v572_v13 = vld [vmem:[%s3738_s5] sm:$0xff] }
 0x15b   : > { %v825_v14 = vpop.permute.xlu1 %824  ;;  %2841 = vmatprep.subr.mxu1 %v3161_v1 }
 0x15d   : > { %v827_v15 = vpop.permute.xlu0 %826  ;;  %2839 = vmatmul.mubr.msk.f32.vlgmr.msra.gmra.mxu1 %vm661_vm2, %v657_v12  ;;  %v573_v12 = vld [vmem:[%s3738_s5 + $0x8] sm:$0xff] }
 0x15e   : > { %2847 = vmatpush3.xpose.msk.msra.mxu0 %vm661_vm2, %v827_v15  ;;  %2843 = vmatprep.mubr.msk.f32.mxu1 %vm3162_vm0, %v3161_v1 }
 0x15f   : > { %v992_v16 = vpop.permute.xlu1 %991  ;;  %2856 = vmatprep.subr.mxu0 %v3161_v1 }
 0x161   : > { %2849 = vmatmul.mubr.msk.f32.vlgmr.msra.gmra.mxu0 %vm661_vm2, %v825_v14  ;;  %v990_v17 = vpop.permute.xlu0 %989 }
 0x162   : > { %2857 = vmatpush3.xpose.msk.msra.mxu0 %vm661_vm2, %v992_v16  ;;  %2858 = vmatprep.mubr.msk.f32.mxu0 %vm3162_vm0, %v3161_v1 }
 0x163   : > { %2866 = vmatprep.subr.mxu0 %v3161_v1  ;;  %v1157_v18 = vpop.permute.xlu1 %1156 }
 0x165   : > { %2859 = vmatmul.mubr.msk.f32.vlgmr.msra.gmra.mxu0 %vm661_vm2, %v990_v17  ;;  %v1155_v19 = vpop.permute.xlu0 %1154 }
 0x166   : > { %2867 = vmatpush3.xpose.msk.msra.mxu0 %vm661_vm2, %v1157_v18  ;;  %2868 = vmatprep.mubr.msk.f32.mxu0 %vm3162_vm0, %v3161_v1 }
 0x167   : > { %2898 = vmatprep.subr.mxu0 %v3161_v1 }
 0x169   : > { %2869 = vmatmul.mubr.msk.f32.vlgmr.msra.gmra.mxu0 %vm661_vm2, %v1155_v19 }
 0x16a   : > { %2906 = vmatprep.mubr.msk.f32.mxu0 %vm3162_vm0, %v3161_v1 }
 0x21d   : > { %v733_v20 = vpop.f32.mrf.mxu1 }
 0x21e   : > { %v737_v21 = vsel %vm661_vm2, %v733_v20, -inf }
 0x21f   : > { %738 = vmax.xlane.f32.xlu1 %v737_v21  ;;  %v2840_v22 = vpop.f32.mrf.mxu1 }
 0x221   : > { %v898_v23 = vpop.f32.mrf.mxu0 }
 0x222   : > { %v902_v24 = vsel %vm661_vm2, %v898_v23, -inf }
 0x223   : > { %903 = vmax.xlane.f32.xlu0 %v902_v24  ;;  %v2850_v25 = vpop.f32.mrf.mxu0  ;;  %v2720_v24 = vld [vmem:[%s3739_s6] ss:$0 sm:$0xff] }
 0x225   : > { %v1063_v26 = vpop.f32.mrf.mxu0 }
 0x226   : > { %v1067_v27 = vsel %vm661_vm2, %v1063_v26, -inf }
 0x227   : > { %1068 = vmax.xlane.f32.xlu0 %v1067_v27  ;;  %v2860_v28 = vpop.f32.mrf.mxu0 }
 0x229   : > { %v1228_v29 = vpop.f32.mrf.mxu0 }
 0x22a   : > { %v1232_v30 = vsel %vm661_vm2, %v1228_v29, -inf }
 0x22b   : > { %v2870_v31 = vpop.f32.mrf.mxu0  ;;  %1233 = vmax.xlane.f32.xlu1 %v1232_v30  ;;  %v1446_v30 = vld [vmem:[%s3740_s7 + $0x18] sm:$0xff] }
 0x22c   : > { %v1445_v31 = vld [vmem:[%s3740_s7 + $0x10] sm:$0xff] }
 0x23c   : > { %913 = vrot.lane.b32.xlu1 %v3360_v10, %s3170_s19  ;;  %s3171_s19 = smov 64  }
 0x2a8   : > { %v739_v32 = vpop.xlane.xlu1 %738 }
 0x2a9   : > { %v740_v33 = vsub.f32 %v733_v20, %v739_v32  ;;  %v1443_v32 = vld [vmem:[%s3740_s7] sm:$0xff] }
 0x2ab   : > { %v741_v34 = vmul.f32 1.442695, %v740_v33 }
 0x2ac   : > { %v904_v35 = vpop.xlane.xlu0 %903 }
 0x2ad   : > { %3061 = vpow2.f32 %v741_v34  ;;  %v905_v36 = vsub.f32 %v898_v23, %v904_v35 }
 0x2af   : > { %v906_v37 = vmul.f32 1.442695, %v905_v36 }
 0x2b0   : > { %v1069_v47 = vpop.xlane.xlu0 %1068 }
 0x2b1   : > { %3063 = vpow2.f32 %v906_v37  ;;  %v1070_v48 = vsub.f32 %v1063_v26, %v1069_v47 }
 0x2b3   : > { %v1071_v49 = vmul.f32 1.442695, %v1070_v48 }
 0x2b4   : > { %v1234_v38 = vpop.xlane.xlu1 %1233 }
 0x2b5   : > { %v1235_v39 = vsub.f32 %v1228_v29, %v1234_v38 }
 0x2b7   : > { %v1236_v40 = vmul.f32 1.442695, %v1235_v39 }
 0x2b8   : > { %v914_v52 = vpop.permute.xlu1 %913 }
 0x2b9   : > { %3065 = vpow2.f32 %v1236_v40 }
 0x2ba   : > { %v3062_v41 = vpop.eup %3061  ;;  %3067 = vpow2.f32 %v1071_v49 }
 0x2bb   : > { %v743_v42 = vsel %vm661_vm2, %v3062_v41, 0.0 }
 0x2bc   : > { %744 = vadd.xlane.f32.xlu0 %v743_v42 }
 0x2be   : > { %v3064_v43 = vpop.eup %3063 }
 0x2bf   : > { %v908_v44 = vsel %vm661_vm2, %v3064_v43, 0.0 }
 0x2c0   : > { %909 = vadd.xlane.f32.xlu1 %v908_v44 }
 0x2c6   : > { %v3066_v45 = vpop.eup %3065 }
 0x2c7   : > { %v1238_v46 = vsel %vm661_vm2, %v3066_v45, 0.0  ;;  %v3068_v50 = vpop.eup %3067 }
 0x2c8   : > { %1239 = vadd.xlane.f32.xlu1 %v1238_v46  ;;  %v1073_v51 = vsel %vm661_vm2, %v3068_v50, 0.0  ;;  %v2722_v46 = vld [vmem:[%s3741_s8] ss:$0 sm:$0xff] }
 0x2d2   : > { %748 = vrot.lane.b32.xlu0 %v3360_v10, %s3171_s19  ;;  %s3174_s19 = smov 8  }
 0x2d9   : > { %1078 = vrot.lane.b32.xlu1 %v3360_v10, %s3172_s21  ;;  %s3783_s21 = smov 88  }
 0x2f1   : > { %1074 = vadd.xlane.f32.xlu0 %v1073_v51 }
 0x307   : > { %1243 = vrot.lane.b32.xlu0 %v3360_v10, %s3173_s29  ;;  %s3782_s29 = smov 104  }
 0x345   : > { %v745_v53 = vpop.xlane.xlu0 %744 }
 0x346   : > { %3069 = vrcp.f32 %v745_v53 }
 0x349   : > { %v749_v54 = vpop.permute.xlu0 %748  ;;  %v910_v55 = vpop.xlane.xlu1 %909 }
 0x34a   : > { %3071 = vrcp.f32 %v910_v55  ;;  %2842 = vmatpush3.msra.mxu1 %v749_v54 }
 0x34b   : > { %2851 = vmatprep.subr.mxu1 %v3161_v1 }
 0x351   : > { %v1240_v57 = vpop.xlane.xlu1 %1239 }
 0x353   : > { %v3070_v56 = vpop.eup %3069 }
 0x354   : > { %v747_v58 = vmul.f32 %v3070_v56, %v3062_v41 }
 0x355   : > { %v1079_v61 = vpop.permute.xlu1 %1078 }
 0x356   : > { %2844 = vmatmul.mubr.msk.f32.vlgmr.msra.gmra.mxu1 %vm661_vm2, %v747_v58 }
 0x357   : > { %v3072_v59 = vpop.eup %3071  ;;  %2852 = vmatpush3.msra.mxu1 %v914_v52  ;;  %2853 = vmatprep.mubr.msk.f32.mxu1 %vm3162_vm0, %v3161_v1 }
 0x358   : > { %2861 = vmatprep.subr.mxu1 %v3161_v1  ;;  %v912_v60 = vmul.f32 %v3072_v59, %v3064_v43 }
 0x35a   : > { %2854 = vmatmul.mubr.msk.f32.vlgmr.msra.gmra.mxu1 %vm661_vm2, %v912_v60  ;;  %v3492_v60 = vld [vmem:[%s3748_s15] sm:$0xff] }
 0x35b   : > { %2862 = vmatpush3.msra.mxu1 %v1079_v61  ;;  %2863 = vmatprep.mubr.msk.f32.mxu1 %vm3162_vm0, %v3161_v1 }
 0x35c   : > { %2871 = vmatprep.subr.mxu1 %v3161_v1 }
 0x37a   : > { %v1075_v62 = vpop.xlane.xlu0 %1074 }
 0x37b   : > { %3073 = vrcp.f32 %v1075_v62  ;;  %v3497_v62 = vld [vmem:[%s3749_s16] sm:$0xff] }
 0x37c   : > { %3075 = vrcp.f32 %v1240_v57 }
 0x37e   : > { %v1244_v3 = vpop.permute.xlu0 %1243 }
 0x388   : > { %v3074_v63 = vpop.eup %3073 }
 0x389   : > { %v1077_v0 = vmul.f32 %v3074_v63, %v3068_v50  ;;  %v3076_v2 = vpop.eup %3075 }
 0x38a   : > { %v1242_v4 = vmul.f32 %v3076_v2, %v3066_v45  ;;  %v566_v45 = vld [vmem:[%s560_s26] sm:$0xff]  ;;  %s3781_s26 = smov 112  }
 0x38b   : > { %2864 = vmatmul.mubr.msk.f32.vlgmr.msra.gmra.mxu1 %vm661_vm2, %v1077_v0 }
 0x38c   : > { %2872 = vmatpush3.msra.mxu1 %v1244_v3  ;;  %2873 = vmatprep.mubr.msk.f32.mxu1 %vm3162_vm0, %v3161_v1 }
 0x38d   : > { %2876 = vmatprep.subr.mxu1 %v3161_v1 }
 0x38f   : > { %2874 = vmatmul.mubr.msk.f32.vlgmr.msra.gmra.mxu1 %vm661_vm2, %v1242_v4 }
 0x390   : > { %2884 = vmatprep.mubr.msk.f32.mxu1 %vm3162_vm0, %v3161_v1  ;;  %2877 = vmatpush3.msra.mxu1 %v575_v5 }
 0x391   : > { %2878 = vmatprep.subr.mxu1 %v3161_v1 }
 0x392   : > { %2879 = vmatpush3.msra.mxu1 %v574_v11 }
 0x393   : > { %2880 = vmatprep.subr.mxu1 %v3161_v1 }
 0x394   : > { %2881 = vmatpush3.msra.mxu1 %v573_v12 }
 0x395   : > { %2882 = vmatprep.subr.mxu1 %v3161_v1 }
 0x396   : > { %2883 = vmatpush3.msra.mxu1 %v572_v13 }
 0x397   : > { %2887 = vmatprep.subr.mxu1 %v3161_v1 }
 0x416   : > { %v820_v6 = vpop.f32.mrf.mxu1 }
 0x418   : > { %v2845_v8 = vpop.f32.mrf.mxu1 }
 0x41a   : > { %v985_v9 = vpop.f32.mrf.mxu1 }
 0x41b   : > { %1320 = vrot.lane.b32.xlu1 %v985_v9, %s3174_s19 }
 0x41c   : > { %v2855_v10 = vpop.f32.mrf.mxu1 }
 0x44b   : > { %v1150_v14 = vpop.f32.mrf.mxu1 }
 0x44c   : > { %1324 = vrot.lane.b32.xlu0 %v1150_v14, %s3765_s23 }
 0x44d   : > { %v2865_v15 = vpop.f32.mrf.mxu1 }
 0x44f   : > { %v1315_v16 = vpop.f32.mrf.mxu1 }
 0x450   : > { %1328 = vrot.lane.b32.xlu1 %v1315_v16, %s3764_s20 }
 0x451   : > { %v2875_v17 = vpop.f32.mrf.mxu1 }
 0x48d   : > { %v1321_v18 = vpop.permute.xlu1 %1320 }
 0x48e   : > { %v1331_v20 = vsel %vm661_vm2, %v820_v6, %v1321_v18 }
 0x4be   : > { %v1325_v19 = vpop.permute.xlu0 %1324 }
 0x4bf   : > { %v1333_v21 = vsel %vm1332_vm3, %v1331_v20, %v1325_v19 }
 0x4c2   : > { %v1329_v22 = vpop.permute.xlu1 %1328 }
 0x4c3   : > { %v1335_v23 = vsel %vm1334_vm4, %v1333_v21, %v1329_v22 }
 0x4c4   : > { %2885 = vmatmul.mubr.msk.f32.vlgmr.msra.gmra.mxu1 %vm583_vm1, %v1335_v23 }
 0x4c5   : > { %2895 = vmatprep.mubr.msk.f32.mxu1 %vm3162_vm0, %v3161_v1  ;;  %2888 = vmatpush3.msra.mxu1 %v1446_v30 }
 0x4c6   : > { %2889 = vmatprep.subr.mxu1 %v3161_v1 }
 0x4c7   : > { %2890 = vmatpush3.msra.mxu1 %v1445_v31 }
 0x4c8   : > { %2891 = vmatprep.subr.mxu1 %v3161_v1 }
 0x584   : > { %v1411_v25 = vpop.f32.mrf.mxu1 }
 0x585   : > { %v1412_v26 = vadd.f32 %v2720_v24, %v1411_v25 }
 0x586   : > { %v2886_v27 = vpop.f32.mrf.mxu1 }
 0x587   : > { %v1415_v28 = vadd.f32 %v1412_v26, %v3350_v7  ;;  %v1444_v7 = vld [vmem:[%s3740_s7 + $0x8] sm:$0xff] }
 0x588   : > { %2892 = vmatpush3.msra.mxu1 %v1444_v7 }
 0x589   : > { %v1416_v29 = vsel %vm583_vm1, %v1415_v28, 0.0  ;;  %2893 = vmatprep.subr.mxu1 %v3161_v1 }
 0x58a   : > { %1417 = vadd.xlane.f32.xlu0 %v1416_v29  ;;  %2894 = vmatpush3.msra.mxu1 %v1443_v32 }
 0x58b   : > { %2909 = vmatprep.subr.mxu1 %v3161_v1  ;;  %2896 = vmatmul.mubr.msk.f32.vlgmr.msra.gmra.mxu1 %vm583_vm1, %v566_v45 }
 0x58c   : > { %2911 = vmatprep.mubr.msk.f32.mxu1 %vm3162_vm0, %v3161_v1 }
 0x5a0   : > { %1542 = vrot.lane.b32.xlu0 %v1446_v30, %s3163_s0 }
 0x5a4   : > { %1538 = vrot.lane.b32.xlu0 %v1444_v7, %s3163_s0 }
 0x5a8   : > { %1548 = vrot.lane.b32.xlu0 %v2722_v46, %s3163_s0 }
 0x613   : > { %v1418_v33 = vpop.xlane.xlu0 %1417 }
 0x614   : > { %v1419_v34 = vrot.slane %v1418_v33, 4 }
 0x616   : > { %v1420_v35 = vadd.f32 %v1419_v34, %v1418_v33 }
 0x617   : > { %v1543_v44 = vpop.permute.xlu0 %1542 }
 0x618   : > { %v1421_v36 = vrot.slane %v1420_v35, 2  ;;  %2899 = vmatpush3.msra.mxu0 %v1543_v44 }
 0x619   : > { %2900 = vmatprep.subr.mxu0 %v3161_v1 }
 0x61a   : > { %v1422_v37 = vadd.f32 %v1421_v36, %v1420_v35 }
 0x61b   : > { %v1539_v51 = vpop.permute.xlu0 %1538 }
 0x61c   : > { %v1423_v38 = vrot.slane %v1422_v37, 1 }
 0x61e   : > { %v1424_v39 = vadd.f32 %v1423_v38, %v1422_v37 }
 0x61f   : > { %v1549_v6 = vpop.permute.xlu0 %1548 }
 0x620   : > { %v1425_v40 = vmul.f32 0.00390625, %v1424_v39 }
 0x622   : > { %v1426_v41 = vsub.f32 %v1415_v28, %v1425_v40 }
 0x624   : > { %v1427_v42 = vmul.f32 %v1426_v41, %v1426_v41 }
 0x626   : > { %v1428_v43 = vsel %vm583_vm1, %v1427_v42, 0.0 }
 0x627   : > { %1429 = vadd.xlane.f32.xlu1 %v1428_v43 }
 0x638   : > { %1540 = vrot.lane.b32.xlu1 %v1445_v31, %s3163_s0 }
 0x63c   : > { %1536 = vrot.lane.b32.xlu1 %v1443_v32, %s3163_s0 }
 0x64b   : > { %v1528_v2 = vpop.f32.mrf.mxu1 }
 0x64c   : > { %v1529_v3 = vadd.f32 %v2722_v46, %v1528_v2 }
 0x64d   : > { %v2897_v4 = vpop.f32.mrf.mxu1 }
 0x64e   : > { %v1624_v5 = vmul.f32 0.35355338, %v1529_v3 }
 0x650   : > { %1788 = vrot.lane.b32.xlu0 %v1624_v5, %s3780_s18 }
 0x654   : > { %1953 = vrot.lane.b32.xlu0 %v1624_v5, %s3781_s26 }
 0x658   : > { %2118 = vrot.lane.b32.xlu0 %v1624_v5, %s3782_s29 }
 0x6b0   : > { %v1430_v47 = vpop.xlane.xlu1 %1429 }
 0x6b1   : > { %v1431_v48 = vrot.slane %v1430_v47, 4 }
 0x6b3   : > { %v1432_v49 = vadd.f32 %v1431_v48, %v1430_v47 }
 0x6b4   : > { %v1541_v50 = vpop.permute.xlu1 %1540 }
 0x6b5   : > { %v1433_v52 = vrot.slane %v1432_v49, 2  ;;  %2901 = vmatpush3.msra.mxu0 %v1541_v50 }
 0x6b6   : > { %2902 = vmatprep.subr.mxu0 %v3161_v1 }
 0x6b7   : > { %v1434_v53 = vadd.f32 %v1433_v52, %v1432_v49  ;;  %2903 = vmatpush3.msra.mxu0 %v1539_v51 }
 0x6b8   : > { %v1537_v54 = vpop.permute.xlu1 %1536  ;;  %2904 = vmatprep.subr.mxu0 %v3161_v1 }
 0x6b9   : > { %v1435_v55 = vrot.slane %v1434_v53, 1  ;;  %2905 = vmatpush3.msra.mxu0 %v1537_v54 }
 0x6ba   : > { %2919 = vmatprep.subr.mxu0 %v3161_v1 }
 0x6bb   : > { %v1436_v56 = vadd.f32 %v1435_v55, %v1434_v53 }
 0x6bd   : > { %v1437_v57 = vmul.f32 0.00390625, %v1436_v56 }
 0x6bf   : > { %v1438_v58 = vadd.f32 1e-05, %v1437_v57 }
 0x6c1   : > { %3077 = vrsqrt.f32 %v1438_v58 }
 0x6c2   : > { %v1789_v11 = vpop.permute.xlu0 %1788 }
 0x6c6   : > { %v1954_v14 = vpop.permute.xlu0 %1953 }
 0x6ca   : > { %v2119_v16 = vpop.permute.xlu0 %2118 }
 0x6ce   : > { %v3078_v59 = vpop.eup %3077 }
 0x6cf   : > { %v1440_v61 = vmul.f32 %v3078_v59, %v1426_v41 }
 0x6d1   : > { %v1441_v63 = vmul.f32 %v1440_v61, %v3492_v60 }
 0x6d3   : > { %v3501_v0 = vadd.f32 %v1441_v63, %v3497_v62 }
 0x6d5   : > { %2907 = vmatmul.mubr.msk.f32.vlgmr.msra.gmra.mxu0 %vm583_vm1, %v3501_v0 }
 0x6d6   : > { %2921 = vmatprep.mubr.msk.f32.mxu0 %vm3162_vm0, %v3161_v1 }
 0x795   : > { %v1620_v8 = vpop.f32.mrf.mxu0 }
 0x796   : > { %v3510_v9 = vadd.f32 %v1620_v8, %v1549_v6  ;;  %v1451_v6 = vld [vmem:[%s3742_s9 + $0x18] sm:$0xff]  ;;  %v1450_v8 = vld [vmem:[%s3742_s9 + $0x10] sm:$0xff] }
 0x797   : > { %v2908_v10 = vpop.f32.mrf.mxu0 }
 0x798   : > { %1790 = vrot.lane.b32.xlu1 %v3510_v9, %s3780_s18  ;;  %2910 = vmatpush3.xpose.msk.msra.mxu1 %vm661_vm2, %v3510_v9  ;;  %v1448_v10 = vld [vmem:[%s3742_s9] sm:$0xff] }
 0x799   : > { %2914 = vmatprep.subr.mxu1 %v3161_v1 }
 0x79b   : > { %2912 = vmatmul.mubr.msk.f32.vlgmr.msra.gmra.mxu1 %vm661_vm2, %v1624_v5 }
 0x79c   : > { %1955 = vrot.lane.b32.xlu1 %v3510_v9, %s3781_s26  ;;  %2916 = vmatprep.mubr.msk.f32.mxu1 %vm3162_vm0, %v3161_v1 }
 0x7a0   : > { %2120 = vrot.lane.b32.xlu1 %v3510_v9, %s3782_s29 }
 0x80a   : > { %v1791_v12 = vpop.permute.xlu1 %1790 }
 0x80b   : > { %2920 = vmatpush3.xpose.msk.msra.mxu0 %vm661_vm2, %v1791_v12 }
 0x80c   : > { %2929 = vmatprep.subr.mxu0 %v3161_v1 }
 0x80e   : > { %v1956_v13 = vpop.permute.xlu1 %1955  ;;  %2922 = vmatmul.mubr.msk.f32.vlgmr.msra.gmra.mxu0 %vm661_vm2, %v1789_v11 }
 0x80f   : > { %2930 = vmatpush3.xpose.msk.msra.mxu0 %vm661_vm2, %v1956_v13  ;;  %2931 = vmatprep.mubr.msk.f32.mxu0 %vm3162_vm0, %v3161_v1 }
 0x810   : > { %2939 = vmatprep.subr.mxu0 %v3161_v1 }
 0x812   : > { %v2121_v15 = vpop.permute.xlu1 %2120  ;;  %2932 = vmatmul.mubr.msk.f32.vlgmr.msra.gmra.mxu0 %vm661_vm2, %v1954_v14 }
 0x813   : > { %2940 = vmatpush3.xpose.msk.msra.mxu0 %vm661_vm2, %v2121_v15  ;;  %2941 = vmatprep.mubr.msk.f32.mxu0 %vm3162_vm0, %v3161_v1 }
 0x814   : > { %2949 = vmatprep.subr.mxu0 %v3161_v1 }
 0x816   : > { %2942 = vmatmul.mubr.msk.f32.vlgmr.msra.gmra.mxu0 %vm661_vm2, %v2119_v16 }
 0x817   : > { %2957 = vmatprep.mubr.msk.f32.mxu0 %vm3162_vm0, %v3161_v1  ;;  %2950 = vmatpush3.msra.mxu0 %v1451_v6 }
 0x818   : > { %2951 = vmatprep.subr.mxu0 %v3161_v1 }
 0x819   : > { %2952 = vmatpush3.msra.mxu0 %v1450_v8 }
 0x81a   : > { %2953 = vmatprep.subr.mxu0 %v3161_v1 }
 0x85b   : > { %v1697_v17 = vpop.f32.mrf.mxu1 }
 0x85c   : > { %v1701_v18 = vsel %vm661_vm2, %v1697_v17, -inf }
 0x85d   : > { %1702 = vmax.xlane.f32.xlu1 %v1701_v18  ;;  %v2913_v19 = vpop.f32.mrf.mxu1 }
 0x8ce   : > { %v1862_v20 = vpop.f32.mrf.mxu0 }
 0x8cf   : > { %v1866_v21 = vsel %vm661_vm2, %v1862_v20, -inf }
 0x8d0   : > { %1867 = vmax.xlane.f32.xlu0 %v1866_v21  ;;  %v2923_v22 = vpop.f32.mrf.mxu0 }
 0x8d2   : > { %v2027_v23 = vpop.f32.mrf.mxu0 }
 0x8d3   : > { %v2031_v24 = vsel %vm661_vm2, %v2027_v23, -inf }
 0x8d4   : > { %2032 = vmax.xlane.f32.xlu0 %v2031_v24  ;;  %v2933_v25 = vpop.f32.mrf.mxu0 }
 0x8d6   : > { %v2192_v26 = vpop.f32.mrf.mxu0 }
 0x8d7   : > { %v2196_v27 = vsel %vm661_vm2, %v2192_v26, -inf }
 0x8d8   : > { %v2943_v28 = vpop.f32.mrf.mxu0  ;;  %2197 = vmax.xlane.f32.xlu1 %v2196_v27 }
 0x8e6   : > { %v1703_v29 = vpop.xlane.xlu1 %1702 }
 0x8e7   : > { %v1704_v30 = vsub.f32 %v1697_v17, %v1703_v29 }
 0x8e9   : > { %v1705_v31 = vmul.f32 1.442695, %v1704_v30  ;;  %1877 = vrot.lane.b32.xlu1 %v3510_v9, %s3783_s21  ;;  %s550_s21 = sand.u32 1, %s3151_s25  }
 0x8ea   : > { %s2615_s26 = scalar_lea.sflag [#allocation3], %s550_s21 }
 0x8eb   : > { %3079 = vpow2.f32 %v1705_v31 }
 0x8f8   : > { %v3080_v7 = vpop.eup %3079 }
 0x8f9   : > { %v1707_v32 = vsel %vm661_vm2, %v3080_v7, 0.0 }
 0x8fa   : > { %1708 = vadd.xlane.f32.xlu0 %v1707_v32 }
 0x910   : > { %1712 = vrot.lane.b32.xlu0 %v3510_v9, %s3163_s0  ;;  %s3784_s0 = smov 80  }
 0x959   : > { %v1868_v33 = vpop.xlane.xlu0 %1867 }
 0x95a   : > { %v1869_v34 = vsub.f32 %v1862_v20, %v1868_v33 }
 0x95c   : > { %v1870_v35 = vmul.f32 1.442695, %v1869_v34 }
 0x95d   : > { %v2033_v36 = vpop.xlane.xlu0 %2032 }
 0x95e   : > { %3081 = vpow2.f32 %v1870_v35  ;;  %v2034_v37 = vsub.f32 %v2027_v23, %v2033_v36  ;;  %v2737_v23 = vld [vmem:[%s3743_s10] ss:$0 sm:$0xff] }
 0x960   : > { %v2035_v38 = vmul.f32 1.442695, %v2034_v37 }
 0x961   : > { %v2198_v39 = vpop.xlane.xlu1 %2197 }
 0x962   : > { %3083 = vpow2.f32 %v2035_v38  ;;  %v2199_v40 = vsub.f32 %v2192_v26, %v2198_v39  ;;  %v2407_v39 = vld [vmem:[%s3744_s11 + $0x10] sm:$0xff] }
 0x964   : > { %v2200_v41 = vmul.f32 1.442695, %v2199_v40  ;;  %v2406_v40 = vld [vmem:[%s3744_s11 + $0x8] sm:$0xff] }
 0x965   : > { %v1878_v52 = vpop.permute.xlu1 %1877 }
 0x966   : > { %3085 = vpow2.f32 %v2200_v41  ;;  %v2405_v41 = vld [vmem:[%s3744_s11] sm:$0xff] }
 0x96b   : > { %v3082_v42 = vpop.eup %3081 }
 0x96c   : > { %v1872_v43 = vsel %vm661_vm2, %v3082_v42, 0.0 }
 0x96d   : > { %1873 = vadd.xlane.f32.xlu1 %v1872_v43  ;;  %v2506_v43 = vld [vmem:[%s3746_s13 + $0x70] sm:$0xff] }
 0x96f   : > { %v3084_v44 = vpop.eup %3083 }
 0x970   : > { %v2037_v45 = vsel %vm661_vm2, %v3084_v44, 0.0 }
 0x971   : > { %2038 = vadd.xlane.f32.xlu0 %v2037_v45  ;;  %v2504_v45 = vld [vmem:[%s3746_s13 + $0x60] sm:$0xff] }
 0x973   : > { %v3086_v46 = vpop.eup %3085 }
 0x974   : > { %v2202_v47 = vsel %vm661_vm2, %v3086_v46, 0.0 }
 0x975   : > { %2203 = vadd.xlane.f32.xlu1 %v2202_v47  ;;  %v2502_v47 = vld [vmem:[%s3746_s13 + $0x50] sm:$0xff] }
 0x983   : > { %v1709_v48 = vpop.xlane.xlu0 %1708 }
 0x984   : > { %3087 = vrcp.f32 %v1709_v48  ;;  %v2501_v48 = vld [vmem:[%s3746_s13 + $0x48] sm:$0xff] }
 0x986   : > { %2042 = vrot.lane.b32.xlu1 %v3510_v9, %s3784_s0  ;;  %s2703_s0 = sshll.u32 %s550_s21, 3 }
 0x987   : > { %2207 = vrot.lane.b32.xlu0 %v3510_v9, %s3785_s30  ;;  %v1713_v49 = vpop.permute.xlu0 %1712  ;;  %v1449_v9 = vld [vmem:[%s3742_s9 + $0x8] sm:$0xff]  ;;  %s3786_s30 = smov 16  }
 0x988   : > { %2915 = vmatpush3.msra.mxu1 %v1713_v49  ;;  %2954 = vmatpush3.msra.mxu0 %v1449_v9  ;;  %v2500_v49 = vld [vmem:[%s3746_s13 + $0x40] sm:$0xff]  ;;  %v2494_v9 = vld [vmem:[%s3746_s13 + $0x10] sm:$0xff] }
 0x989   : > { %2924 = vmatprep.subr.mxu1 %v3161_v1  ;;  %2955 = vmatprep.subr.mxu0 %v3161_v1 }
 0x98a   : > { %2956 = vmatpush3.msra.mxu0 %v1448_v10  ;;  %v2493_v10 = vld [vmem:[%s3746_s13 + $0x8] sm:$0xff] }
 0x98b   : > { %2971 = vmatprep.subr.mxu0 %v3161_v1 }
 0x991   : > { %v3088_v50 = vpop.eup %3087 }
 0x992   : > { %v1711_v51 = vmul.f32 %v3088_v50, %v3080_v7  ;;  %v2499_v50 = vld [vmem:[%s3746_s13 + $0x38] sm:$0xff] }
 0x994   : > { %2917 = vmatmul.mubr.msk.f32.vlgmr.msra.gmra.mxu1 %vm661_vm2, %v1711_v51  ;;  %v2498_v51 = vld [vmem:[%s3746_s13 + $0x30] sm:$0xff] }
 0x995   : > { %2925 = vmatpush3.msra.mxu1 %v1878_v52  ;;  %2926 = vmatprep.mubr.msk.f32.mxu1 %vm3162_vm0, %v3161_v1  ;;  %v2497_v52 = vld [vmem:[%s3746_s13 + $0x28] sm:$0xff] }
 0x996   : > { %2934 = vmatprep.subr.mxu1 %v3161_v1 }
 0x9f6   : > { %v1874_v53 = vpop.xlane.xlu1 %1873 }
 0x9f7   : > { %3089 = vrcp.f32 %v1874_v53  ;;  %v2496_v53 = vld [vmem:[%s3746_s13 + $0x20] sm:$0xff] }
 0x9fa   : > { %v2039_v54 = vpop.xlane.xlu0 %2038 }
 0x9fb   : > { %3091 = vrcp.f32 %v2039_v54  ;;  %v2495_v54 = vld [vmem:[%s3746_s13 + $0x18] sm:$0xff] }
 0x9fe   : > { %v2204_v55 = vpop.xlane.xlu1 %2203  ;;  %v2208_v63 = vpop.permute.xlu0 %2207 }
 0x9ff   : > { %3093 = vrcp.f32 %v2204_v55 }
 0xa02   : > { %v2043_v58 = vpop.permute.xlu1 %2042 }
 0xa04   : > { %v3090_v56 = vpop.eup %3089 }
 0xa05   : > { %v1876_v57 = vmul.f32 %v3090_v56, %v3082_v42  ;;  %v2507_v42 = vld [vmem:[%s3746_s13 + $0x78] sm:$0xff] }
 0xa07   : > { %2927 = vmatmul.mubr.msk.f32.vlgmr.msra.gmra.mxu1 %vm661_vm2, %v1876_v57 }
 0xa08   : > { %v3092_v59 = vpop.eup %3091  ;;  %2935 = vmatpush3.msra.mxu1 %v2043_v58  ;;  %2936 = vmatprep.mubr.msk.f32.mxu1 %vm3162_vm0, %v3161_v1 }
 0xa09   : > { %2944 = vmatprep.subr.mxu1 %v3161_v1  ;;  %v2041_v61 = vmul.f32 %v3092_v59, %v3084_v44  ;;  %v2505_v44 = vld [vmem:[%s3746_s13 + $0x68] sm:$0xff] }
 0xa0b   : > { %2937 = vmatmul.mubr.msk.f32.vlgmr.msra.gmra.mxu1 %vm661_vm2, %v2041_v61 }
 0xa0c   : > { %v3094_v2 = vpop.eup %3093  ;;  %2945 = vmatpush3.msra.mxu1 %v2208_v63  ;;  %2946 = vmatprep.mubr.msk.f32.mxu1 %vm3162_vm0, %v3161_v1 }
 0xa0d   : > { %v2206_v3 = vmul.f32 %v3094_v2, %v3086_v46  ;;  %2960 = vmatprep.subr.mxu1 %v3161_v1  ;;  %v2503_v46 = vld [vmem:[%s3746_s13 + $0x58] sm:$0xff] }
 0xa0f   : > { %2947 = vmatmul.mubr.msk.f32.vlgmr.msra.gmra.mxu1 %vm661_vm2, %v2206_v3 }
 0xa10   : > { %2968 = vmatprep.mubr.msk.f32.mxu1 %vm3162_vm0, %v3161_v1 }
 0xa54   : > { %v1784_v4 = vpop.f32.mrf.mxu1 }
 0xa56   : > { %v2918_v5 = vpop.f32.mrf.mxu1 }
 0xac7   : > { %v1949_v11 = vpop.f32.mrf.mxu1 }
 0xac8   : > { %2284 = vrot.lane.b32.xlu1 %v1949_v11, %s3174_s19  ;;  %v2492_v11 = vld [vmem:[%s3746_s13] sm:$0xff] }
 0xac9   : > { %v2928_v12 = vpop.f32.mrf.mxu1 }
 0xaca   : > { %v2739_v12 = vld [vmem:[%s3745_s12] ss:$0 sm:$0xff] }
 0xacb   : > { %v2114_v13 = vpop.f32.mrf.mxu1 }
 0xacc   : > { %2288 = vrot.lane.b32.xlu0 %v2114_v13, %s3786_s30  ;;  %s2743_s30 = sshll.u32 %s3289_s28, 7  ;;  %s3177_s28 = smov [#allocation2]  }
 0xacd   : > { %v2938_v14 = vpop.f32.mrf.mxu1  ;;  %s2626_s18 = scalar_lea.hbm %s3750_s17, %s2743_s30 }
 0xacf   : > { %v2279_v15 = vpop.f32.mrf.mxu1 }
 0xad0   : > { %2292 = vrot.lane.b32.xlu1 %v2279_v15, %s3787_s22  ;;  %s552_s22 = scalar_lea.vmem [#allocation2], %s2703_s0  ;;  %s3103_s0 = sshll.u32 %s3177_s28, 4  ;;  %s3104_s0 = int_to_ptr.vmem [resolvable:$false] %s3103_s0 }
 0xad1   : > { %v2948_v16 = vpop.f32.mrf.mxu1  ;;  %s2628_s19 = sshll.u32 %s552_s22, 4  ;;  %s3105_s2 = scalar_lea.vmem %s3104_s0, 256  ;;  %s2629_s19 = int_to_ptr.vmem [resolvable:$true] %s2628_s19 }
 0xad2   : > { %s3099_s29 = scalar_lea.vmem %s2629_s19, 128  ;;  %p3106_p0 = scmp.lt.s32.totalorder %s2629_s19, %s3104_s0 }
 0xad3   : > { %p3100_p11 = scmp.ne.s32.totalorder %s2629_s19, %s3099_s29  ;;  %p3107_p1 = scmp.lt.s32.totalorder %s3105_s2, %s3099_s29 }
 0xad5   : > { %p3101_p12 = pnand %p3100_p11, %p3306_p5  ;;  %p3108_p2 = por %p3107_p1, %p3106_p0 }
 0xad7   : > { %p3102_p13 = pneg %p3101_p12 }
 0xad9   : > { %p3109_p3 = pnand %p3108_p2, %p3102_p13 }
 0xb3a   : > { %v2285_v17 = vpop.permute.xlu1 %2284 }
 0xb3b   : > { %v2295_v19 = vsel %vm661_vm2, %v1784_v4, %v2285_v17 }
 0xb3e   : > { %v2289_v18 = vpop.permute.xlu0 %2288 }
 0xb3f   : > { %v2296_v20 = vsel %vm1332_vm3, %v2295_v19, %v2289_v18  ;;  %v2741_v18 = vld [vmem:[%s3747_s14] ss:$0 sm:$0xff] }
 0xb42   : > { %v2293_v21 = vpop.permute.xlu1 %2292 }
 0xb43   : > { %v2297_v22 = vsel %vm1334_vm4, %v2296_v20, %v2293_v21 }
 0xb44   : > { %2958 = vmatmul.mubr.msk.f32.vlgmr.msra.gmra.mxu0 %vm583_vm1, %v2297_v22 }
 0xb45   : > { %3003 = vmatprep.mubr.msk.f32.mxu0 %vm3162_vm0, %v3161_v1  ;;  %2972 = vmatpush3.msra.mxu0 %v2507_v42 }
 0xb46   : > { %2973 = vmatprep.subr.mxu0 %v3161_v1 }
 0xb47   : > { %2974 = vmatpush3.msra.mxu0 %v2506_v43 }
 0xb48   : > { %2975 = vmatprep.subr.mxu0 %v3161_v1 }
 0xb49   : > { %2976 = vmatpush3.msra.mxu0 %v2505_v44 }
 0xb4a   : > { %2977 = vmatprep.subr.mxu0 %v3161_v1 }
 0xb4b   : > { %2978 = vmatpush3.msra.mxu0 %v2504_v45 }
 0xb4c   : > { %2979 = vmatprep.subr.mxu0 %v3161_v1 }
 0xb4d   : > { %2980 = vmatpush3.msra.mxu0 %v2503_v46 }
 0xb4e   : > { %2981 = vmatprep.subr.mxu0 %v3161_v1 }
 0xb4f   : > { %2982 = vmatpush3.msra.mxu0 %v2502_v47 }
 0xb50   : > { %2983 = vmatprep.subr.mxu0 %v3161_v1 }
 0xb51   : > { %2984 = vmatpush3.msra.mxu0 %v2501_v48 }
 0xb52   : > { %2985 = vmatprep.subr.mxu0 %v3161_v1 }
 0xb53   : > { %2986 = vmatpush3.msra.mxu0 %v2500_v49 }
 0xb54   : > { %2987 = vmatprep.subr.mxu0 %v3161_v1 }
 0xb55   : > { %2988 = vmatpush3.msra.mxu0 %v2499_v50 }
 0xb56   : > { %2989 = vmatprep.subr.mxu0 %v3161_v1 }
 0xb57   : > { %2990 = vmatpush3.msra.mxu0 %v2498_v51 }
 0xb58   : > { %2991 = vmatprep.subr.mxu0 %v3161_v1 }
 0xb59   : > { %2992 = vmatpush3.msra.mxu0 %v2497_v52 }
 0xb5a   : > { %2993 = vmatprep.subr.mxu0 %v3161_v1 }
 0xb5b   : > { %2994 = vmatpush3.msra.mxu0 %v2496_v53 }
 0xb5c   : > { %2995 = vmatprep.subr.mxu0 %v3161_v1 }
 0xb5d   : > { %2996 = vmatpush3.msra.mxu0 %v2495_v54 }
 0xb5e   : > { %2997 = vmatprep.subr.mxu0 %v3161_v1 }
 0xb5f   : > { %2998 = vmatpush3.msra.mxu0 %v2494_v9 }
 0xb60   : > { %2999 = vmatprep.subr.mxu0 %v3161_v1 }
 0xb61   : > { %3000 = vmatpush3.msra.mxu0 %v2493_v10 }
 0xb62   : > { %3001 = vmatprep.subr.mxu0 %v3161_v1 }
 0xb63   : > { %3002 = vmatpush3.msra.mxu0 %v2492_v11 }
 0xc04   : > { %v2373_v24 = vpop.f32.mrf.mxu0 }
 0xc05   : > { %v2374_v25 = vadd.f32 %v2737_v23, %v2373_v24 }
 0xc06   : > { %v2959_v26 = vpop.f32.mrf.mxu0 }
 0xc07   : > { %v2377_v27 = vadd.f32 %v2374_v25, %v3501_v0  ;;  %v2408_v0 = vld [vmem:[%s3744_s11 + $0x18] sm:$0xff] }
 0xc08   : > { %2961 = vmatpush3.msra.mxu1 %v2408_v0 }
 0xc09   : > { %v2378_v28 = vsel %vm583_vm1, %v2377_v27, 0.0  ;;  %2962 = vmatprep.subr.mxu1 %v3161_v1 }
 0xc0a   : > { %2379 = vadd.xlane.f32.xlu0 %v2378_v28  ;;  %2963 = vmatpush3.msra.mxu1 %v2407_v39 }
 0xc0b   : > { %2964 = vmatprep.subr.mxu1 %v3161_v1 }
 0xc0c   : > { %2965 = vmatpush3.msra.mxu1 %v2406_v40 }
 0xc0d   : > { %2966 = vmatprep.subr.mxu1 %v3161_v1 }
 0xc0e   : > { %2967 = vmatpush3.msra.mxu1 %v2405_v41 }
 0xc93   : > { %v2380_v29 = vpop.xlane.xlu0 %2379 }
 0xc94   : > { %v2381_v30 = vrot.slane %v2380_v29, 4 }
 0xc96   : > { %v2382_v31 = vadd.f32 %v2381_v30, %v2380_v29 }
 0xc98   : > { %v2383_v7 = vrot.slane %v2382_v31, 2 }
 0xc9a   : > { %v2384_v32 = vadd.f32 %v2383_v7, %v2382_v31 }
 0xc9c   : > { %v2385_v33 = vrot.slane %v2384_v32, 1 }
 0xc9e   : > { %v2386_v34 = vadd.f32 %v2385_v33, %v2384_v32 }
 0xca0   : > { %v2387_v35 = vmul.f32 0.00390625, %v2386_v34 }
 0xca2   : > { %v3601_v36 = vsub.f32 %v2377_v27, %v2387_v35 }
 0xca4   : > { %v2389_v37 = vmul.f32 %v3601_v36, %v3601_v36 }
 0xca6   : > { %v2390_v38 = vsel %vm583_vm1, %v2389_v37, 0.0 }
 0xca7   : > { %2391 = vadd.xlane.f32.xlu1 %v2390_v38 }
 0xd30   : > { %v2392_v55 = vpop.xlane.xlu1 %2391 }
 0xd31   : > { %v2393_v56 = vrot.slane %v2392_v55, 4 }
 0xd33   : > { %v2394_v57 = vadd.f32 %v2393_v56, %v2392_v55 }
 0xd35   : > { %v2395_v58 = vrot.slane %v2394_v57, 2 }
 0xd37   : > { %v2396_v59 = vadd.f32 %v2395_v58, %v2394_v57 }
 0xd39   : > { %v2397_v61 = vrot.slane %v2396_v59, 1 }
 0xd3b   : > { %v2398_v63 = vadd.f32 %v2397_v61, %v2396_v59 }
 0xd3d   : > { %v2399_v2 = vmul.f32 0.00390625, %v2398_v63 }
 0xd3f   : > { %v2400_v3 = vadd.f32 1e-05, %v2399_v2 }
 0xd41   : > { %3095 = vrsqrt.f32 %v2400_v3 }
 0xd4e   : > { %v3096_v4 = vpop.eup %3095 }
 0xd4f   : > { %v2402_v5 = vmul.f32 %v3096_v4, %v3601_v36 }
 0xd51   : > { %v2403_v6 = vmul.f32 %v2402_v5, %v3492_v60 }
 0xd53   : > { %v2404_v8 = vadd.f32 %v2403_v6, %v3497_v62 }
 0xd55   : > { %2969 = vmatmul.mubr.msk.f32.vlgmr.msra.gmra.mxu1 %vm583_vm1, %v2404_v8 }
 0xe15   : > { %v2485_v13 = vpop.f32.mrf.mxu1 }
 0xe16   : > { %v2486_v14 = vadd.f32 %v2739_v12, %v2485_v13 }
 0xe17   : > { %v2970_v15 = vpop.f32.mrf.mxu1 }
 0xe18   : > { %vm2489_vm5 = vcmp.gt.f32.partialorder %v2486_v14, 0.0  ;;  %v2490_v16 = vmul.f32 0.01, %v2486_v14 }
 0xe1a   : > { %v2491_v17 = vsel %vm2489_vm5, %v2486_v14, %v2490_v16 }
 0xe1b   : > { %3004 = vmatmul.mubr.f32.vlgmr.msra.gmra.mxu0 %v2491_v17 }
 0xedb   : > { %v2581_v19 = vpop.f32.mrf.mxu0 }
 0xedc   : > { %v2582_v20 = vadd.f32 %v2741_v18, %v2581_v19 }
 0xedd   : > { %v3005_v21 = vpop.f32.mrf.mxu0 }
 0xede   : > { %v2585_v1 = vadd.f32 %v2582_v20, %v2404_v8 }
 0xee0   : > { %v2586_v22 = vsel %vm583_vm1, %v2585_v1, 0.0 }
 0xee1   : > { %2587 = vadd.xlane.f32.xlu0 %v2586_v22 }
 0xf6a   : > { %v2588_v23 = vpop.xlane.xlu0 %2587 }
 0xf6b   : > { %v2589_v24 = vrot.slane %v2588_v23, 4 }
 0xf6d   : > { %v2590_v25 = vadd.f32 %v2589_v24, %v2588_v23 }
 0xf6f   : > { %v2591_v26 = vrot.slane %v2590_v25, 2 }
 0xf71   : > { %v2592_v27 = vadd.f32 %v2591_v26, %v2590_v25 }
 0xf73   : > { %v2593_v28 = vrot.slane %v2592_v27, 1 }
 0xf75   : > { %v2594_v29 = vadd.f32 %v2593_v28, %v2592_v27 }
 0xf77   : > { %v2595_v30 = vmul.f32 0.00390625, %v2594_v29 }
 0xf79   : > { %v2596_v31 = vsub.f32 %v2585_v1, %v2595_v30 }
 0xf7b   : > { %v2597_v7 = vmul.f32 %v2596_v31, %v2596_v31 }
 0xf7d   : > { %v2598_v32 = vsel %vm583_vm1, %v2597_v7, 0.0 }
 0xf7e   : > { %2599 = vadd.xlane.f32.xlu0 %v2598_v32 }
0x1007   : > { %v2600_v33 = vpop.xlane.xlu0 %2599 }
0x1008   : > { %v2601_v34 = vrot.slane %v2600_v33, 4 }
0x100a   : > { %v2602_v35 = vadd.f32 %v2601_v34, %v2600_v33 }
0x100c   : > { %v2603_v36 = vrot.slane %v2602_v35, 2 }
0x100e   : > { %v2604_v37 = vadd.f32 %v2603_v36, %v2602_v35 }
0x1010   : > { %v2605_v38 = vrot.slane %v2604_v37, 1 }
0x1012   : > { %v2606_v0 = vadd.f32 %v2605_v38, %v2604_v37 }
0x1014   : > { %v2607_v39 = vmul.f32 0.00390625, %v2606_v0 }
0x1016   : > { %v2608_v40 = vadd.f32 1e-05, %v2607_v39 }
0x1018   : > { %3097 = vrsqrt.f32 %v2608_v40 }
0x1025   : > { %v3098_v41 = vpop.eup %3097 }
0x1026   : > { %v2610_v42 = vmul.f32 %v3098_v41, %v2596_v31 }
0x1028   : > { %v2611_v43 = vmul.f32 %v2610_v42, %v3492_v60 }
0x102a   : > { %v2612_v44 = vadd.f32 %v2611_v43, %v3497_v62 }
0x102c   : > { %2613 = vst.msk [vmem:[%s552_s22] sm:$0xff] %vm583_vm1, %v2612_v44 }
0x102d   : > { %3112 = shalt.err (!%p3109_p3)
}
0x102e   : > { %s3113_s23 = scalar_lea.hbm %s2626_s18, 128  ;;  %s3117_s22 = scalar_lea.hbm %s3750_s17, 256 }
0x102f   : > { %p3114_p4 = scmp.ne.s32.totalorder %s2626_s18, %s3113_s23  ;;  %p3118_p9 = scmp.lt.s32.totalorder %s2626_s18, %s3750_s17 }
0x1030   : > { %p3119_p10 = scmp.lt.s32.totalorder %s3117_s22, %s3113_s23 }
0x1031   : > { %p3115_p7 = pnand %p3114_p4, %p3306_p5 }
0x1032   : > { %p3120_p11 = por %p3119_p10, %p3118_p9 }
0x1033   : > { %p3116_p8 = pneg %p3115_p7 }
0x1035   : > { %p3121_p12 = pnand %p3120_p11, %p3116_p8 }
0x1037   : > { %3124 = shalt.err (!%p3121_p12)
}
0x1038   : > { %3006 = dma.vmem_to_hbm [thread:$0]  (%p3306_p5), %s2629_s19, 128, %s2626_s18, %s2615_s26  }
0x1039 PF: > { %p3012_p13 = scmp.ge.s32.totalorder %s3159_s27, 2  ;;  %s2640_s29 = sand.u32 1, %s3147_s24  }
0x103a   : > { %s2641_s28 = scalar_lea.sflag [#allocation3], %s2640_s29 }
0x103b   : > { %p3009_p0 = pnand %p3012_p13, %p3310_p6 }
0x103d   : > { %p3010_p1 = pneg %p3009_p0 }
0x103f   : > { %3142 = dma.done.wait (%p3010_p1), %s2641_s28, 128  }
0x1040   : > { %3144 = vsyncadd (%p3010_p1), %s2641_s28, 4294967168  ;;  %s3789_s27 = sld [smem:[#allocation6_spill]]  ;;  %s3792_s24 = smov %s3151_s25 }
0x1041   : > { %s3790_s3 = sld [smem:[#allocation5_spill]] }
0x1042   : > { %s3791_s26 = sld [smem:[#allocation7_spill]] }
0x1046   : > { %p27_p2 = scmp.ge.s32.totalorder %s3789_s27, 4  }
0x1047   : > { %s3793_s25 = smov %s3790_s3 }
0x1048   :  { %29 = sbr.rel (!%p27_p2) target bundleno = 8 (0x8), region = 126 }
0x104d   :  { %2646 = vsyncpa [#allocation3], 1 }
0x104e   :  { %2648 = vsyncpa [#allocation3 + $0x1], 1 }

</bundles_post_ra>
